<compile_context>
chip_gen: v7x
topology: tpu7x:2x2x1
jax: 0.10.0
libtpu: 0.0.40
codegen_flags: <defaults>
</compile_context>

<pallas_src>
import functools

import jax
import jax.numpy as jnp
from jax.experimental import pallas as pl
from jax.experimental.pallas import tpu as pltpu


def _round_up(x, m):
    return (x + m - 1) // m * m


# --------------------------- tiled matmul kernel ----------------------------

def _mm_kernel(x_ref, w_ref, b_ref, o_ref, acc_ref, *, act):
    k = pl.program_id(2)

    @pl.when(k == 0)
    def _():
        acc_ref[...] = jnp.zeros_like(acc_ref)

    acc_ref[...] += jnp.dot(x_ref[...], w_ref[...],
                            preferred_element_type=jnp.float32)

    @pl.when(k == pl.num_programs(2) - 1)
    def _():
        acc = acc_ref[...] + b_ref[...]
        if act == "leaky_relu":
            acc = jnp.where(acc >= 0.0, acc, 0.01 * acc)
        elif act == "sigmoid":
            acc = jax.nn.sigmoid(acc)
        o_ref[...] = acc.astype(o_ref.dtype)


def pallas_matmul_bias_act(x, w, b, act="none", out_dtype=jnp.float32):
    """act(x @ w + b), tiled over (M, N, K) with a resident f32 accumulator."""
    m, k = x.shape
    k2, n = w.shape
    assert k == k2, (x.shape, w.shape)

    # MXU-friendly tile sizes (256-wide N/K on v6e/v7x, multiples of (8,128)).
    tm = min(_round_up(m, 8), 256)
    tn = min(_round_up(n, 128), 256)
    tk = min(_round_up(k, 128), 512)
    mp = _round_up(m, tm)
    np_ = _round_up(n, tn)
    kp = _round_up(k, tk)

    xp = x.astype(jnp.bfloat16)
    wp = w.astype(jnp.bfloat16)
    if (mp, kp) != (m, k):
        xp = jnp.pad(xp, ((0, mp - m), (0, kp - k)))
    if (kp, np_) != (k, n):
        wp = jnp.pad(wp, ((0, kp - k), (0, np_ - n)))
    bp = b.reshape(1, n).astype(jnp.float32)
    if np_ != n:
        bp = jnp.pad(bp, ((0, 0), (0, np_ - n)))

    grid = (mp // tm, np_ // tn, kp // tk)
    out_bytes = mp * np_ * jnp.dtype(out_dtype).itemsize
    cost = pl.CostEstimate(
        flops=2 * mp * np_ * kp,
        transcendentals=(mp * np_ if act == "sigmoid" else 0),
        bytes_accessed=2 * mp * kp + 2 * kp * np_ + 4 * np_ + out_bytes,
    )

    out = pl.pallas_call(
        functools.partial(_mm_kernel, act=act),
        out_shape=jax.ShapeDtypeStruct((mp, np_), out_dtype),
        grid_spec=pltpu.PrefetchScalarGridSpec(
            num_scalar_prefetch=0,
            grid=grid,
            in_specs=[
                pl.BlockSpec((tm, tk), lambda i, j, kk: (i, kk)),
                pl.BlockSpec((tk, tn), lambda i, j, kk: (kk, j)),
                pl.BlockSpec((1, tn), lambda i, j, kk: (0, j)),
            ],
            out_specs=pl.BlockSpec((tm, tn), lambda i, j, kk: (i, j)),
            scratch_shapes=[pltpu.VMEM((tm, tn), jnp.float32)],
        ),
        compiler_params=pltpu.CompilerParams(
            dimension_semantics=("parallel", "parallel", "arbitrary"),
            vmem_limit_bytes=32 * 1024 * 1024,  # safe on v7x's 64 MiB VMEM
        ),
        cost_estimate=cost,
    )(xp, wp, bp)
    return out[:m, :n]


# ---------------- fused fc_mu / fc_logvar / reparameterize ------------------

def _latent_kernel(x_ref, w_ref, b_ref, noise_ref,
                   mu_ref, logvar_ref, z_ref, acc_ref, *, lp):
    k = pl.program_id(0)

    @pl.when(k == 0)
    def _():
        acc_ref[...] = jnp.zeros_like(acc_ref)

    acc_ref[...] += jnp.dot(x_ref[...], w_ref[...],
                            preferred_element_type=jnp.float32)

    @pl.when(k == pl.num_programs(0) - 1)
    def _():
        acc = acc_ref[...] + b_ref[...]
        mu = acc[:, :lp]
        logvar = acc[:, lp:]
        mu_ref[...] = mu
        logvar_ref[...] = logvar
        z_ref[...] = mu + noise_ref[...] * jnp.exp(0.5 * logvar)


def pallas_latent_fused(ls, w_mu, b_mu, w_lv, b_lv, noise):
    """One matmul over [W_mu | W_logvar] + in-kernel reparameterization."""
    m, k = ls.shape
    n = w_mu.shape[1]                       # latent_dim
    lp = _round_up(n, 128)                  # lane-dense latent
    mp = _round_up(m, 8)
    tk = min(_round_up(k, 128), 512)
    kp = _round_up(k, tk)

    x = jnp.pad(ls.astype(jnp.bfloat16), ((0, mp - m), (0, kp - k)))
    w_cat = jnp.concatenate([
        jnp.pad(w_mu.astype(jnp.bfloat16), ((0, kp - k), (0, lp - n))),
        jnp.pad(w_lv.astype(jnp.bfloat16), ((0, kp - k), (0, lp - n))),
    ], axis=1)                              # (kp, 2*lp)
    b_cat = jnp.concatenate([
        jnp.pad(b_mu.astype(jnp.float32), (0, lp - n)),
        jnp.pad(b_lv.astype(jnp.float32), (0, lp - n)),
    ]).reshape(1, 2 * lp)
    noise_p = jnp.pad(noise.astype(jnp.float32), ((0, mp - m), (0, lp - n)))

    out_sd = jax.ShapeDtypeStruct((mp, lp), jnp.float32)
    fixed = pl.BlockSpec((mp, lp), lambda kk: (0, 0))
    mu, logvar, z = pl.pallas_call(
        functools.partial(_latent_kernel, lp=lp),
        out_shape=(out_sd, out_sd, out_sd),
        grid_spec=pltpu.PrefetchScalarGridSpec(
            num_scalar_prefetch=0,
            grid=(kp // tk,),
            in_specs=[
                pl.BlockSpec((mp, tk), lambda kk: (0, kk)),
                pl.BlockSpec((tk, 2 * lp), lambda kk: (kk, 0)),
                pl.BlockSpec((1, 2 * lp), lambda kk: (0, 0)),
                fixed,
            ],
            out_specs=(fixed, fixed, fixed),
            scratch_shapes=[pltpu.VMEM((mp, 2 * lp), jnp.float32)],
        ),
        compiler_params=pltpu.CompilerParams(
            dimension_semantics=("arbitrary",),
            vmem_limit_bytes=32 * 1024 * 1024,
        ),
    )(x, w_cat, b_cat, noise_p)
    return mu[:m, :n], logvar[:m, :n], z[:m, :n]


# ------------------------------- conv glue ----------------------------------

def _im2col(x_nhwc, k, stride, pad_lo, pad_hi):
    b, h, w, c = x_nhwc.shape
    xp = jnp.pad(x_nhwc, ((0, 0), (pad_lo, pad_hi), (pad_lo, pad_hi), (0, 0)))
    hp = h + pad_lo + pad_hi
    wp = w + pad_lo + pad_hi
    oh = (hp - k) // stride + 1
    ow = (wp - k) // stride + 1
    cols = []
    for di in range(k):
        for dj in range(k):
            cols.append(xp[:, di:di + stride * oh:stride,
                           dj:dj + stride * ow:stride, :])
    patches = jnp.concatenate(cols, axis=-1)          # (b, oh, ow, k*k*c)
    return patches.reshape(b * oh * ow, k * k * c), (b, oh, ow)


def conv2d(x, w, bias, *, stride, pad, act, out_dtype=jnp.bfloat16):
    """x: NHWC (bf16), w: [k,k,Cin,Cout]."""
    k, _, cin, cout = w.shape
    cols, (b, oh, ow) = _im2col(x, k, stride, pad, pad)
    out = pallas_matmul_bias_act(cols, w.reshape(k * k * cin, cout), bias,
                                 act=act, out_dtype=out_dtype)
    return out.reshape(b, oh, ow, cout)


def conv_transpose2d_s2(x, w, bias, *, act="leaky_relu", out_dtype=jnp.bfloat16):
    """nn.ConvTranspose2d(k=3, stride=2, padding=1, output_padding=1)
    via sub-pixel phase decomposition: one matmul on the UNdilated input.
    w kept in direct-conv orientation [3,3,Cin,Cout] (same convention as the
    zero-dilation lowering it replaces)."""
    b_, h, wd, cin = x.shape
    cout = w.shape[-1]
    # 2x2 taps of the (right/bottom zero-padded) input.
    xp = jnp.pad(x, ((0, 0), (0, 1), (0, 1), (0, 0)))
    taps = [xp[:, di:di + h, dj:dj + wd, :] for di in (0, 1) for dj in (0, 1)]
    cols = jnp.concatenate(taps, axis=-1).reshape(b_ * h * wd, 4 * cin)

    # Combined weight: (tap, cin) -> (phase, cout), phase p = 2r+s gives
    # output pixel (2i+r, 2j+s):
    #   out[2i  ,2j  ] = x[i,j]@w11
    #   out[2i  ,2j+1] = x[i,j]@w10 + x[i,j+1]@w12
    #   out[2i+1,2j  ] = x[i,j]@w01 + x[i+1,j]@w21
    #   out[2i+1,2j+1] = x[i,j]@w00 + x[i,j+1]@w02 + x[i+1,j]@w20 + x[i+1,j+1]@w22
    wc = jnp.zeros((4, cin, 4, cout), w.dtype)
    wc = wc.at[0, :, 0, :].set(w[1, 1])
    wc = wc.at[0, :, 1, :].set(w[1, 0])
    wc = wc.at[1, :, 1, :].set(w[1, 2])
    wc = wc.at[0, :, 2, :].set(w[0, 1])
    wc = wc.at[2, :, 2, :].set(w[2, 1])
    wc = wc.at[0, :, 3, :].set(w[0, 0])
    wc = wc.at[1, :, 3, :].set(w[0, 2])
    wc = wc.at[2, :, 3, :].set(w[2, 0])
    wc = wc.at[3, :, 3, :].set(w[2, 2])
    wc = wc.reshape(4 * cin, 4 * cout)
    bc = jnp.tile(bias, 4)

    out = pallas_matmul_bias_act(cols, wc, bc, act=act, out_dtype=out_dtype)
    out = out.reshape(b_, h, wd, 2, 2, cout)          # (b, i, j, r, s, c)
    out = out.transpose(0, 1, 3, 2, 4, 5)             # (b, i, r, j, s, c)
    return out.reshape(b_, 2 * h, 2 * wd, cout)


# ------------------------------- VAE params ---------------------------------

def init_params(key, in_out_channels, hidden_channels, latent_dim, in_size):
    keys = iter(jax.random.split(key, 64))

    def w_init(shape):
        return jax.random.normal(next(keys), shape, jnp.float32) * 0.05

    def b_init(n):
        return jnp.zeros((n,), jnp.float32)

    params = {}
    enc, c = [], in_out_channels
    for h in hidden_channels:
        enc.append((w_init((3, 3, c, h)), b_init(h)))
        c = h
    params["enc"] = enc

    out_size = in_size // (2 ** len(hidden_channels))
    feat = out_size * out_size * hidden_channels[-1]
    params["fc_mu"] = (w_init((feat, latent_dim)), b_init(latent_dim))
    params["fc_logvar"] = (w_init((feat, latent_dim)), b_init(latent_dim))
    params["dec_in"] = (w_init((latent_dim, feat)), b_init(feat))

    rev = list(reversed(hidden_channels))
    dec = []
    for i in range(len(rev) - 1):
        dec.append((w_init((3, 3, rev[i], rev[i + 1])), b_init(rev[i + 1])))
    params["dec"] = dec
    params["dec_final_t"] = (w_init((3, 3, rev[-1], rev[-1])), b_init(rev[-1]))
    params["dec_final_conv"] = (w_init((3, 3, rev[-1], in_out_channels)),
                                b_init(in_out_channels))
    meta = {"out_size": out_size, "ch0": rev[0]}
    return params, meta


# ------------------------------- VAE forward --------------------------------

def vae_forward(params, x_nchw, noise_key, *, out_size, ch0):
    x = jnp.transpose(x_nchw, (0, 2, 3, 1)).astype(jnp.bfloat16)  # NCHW->NHWC

    # encoder: 3x3 stride-2 convs + LeakyReLU
    for (w, b) in params["enc"]:
        x = conv2d(x, w, b, stride=2, pad=1, act="leaky_relu")

    bsz = x.shape[0]
    # flatten matching torch's flatten(start_dim=1) on NCHW layout
    ls = jnp.transpose(x, (0, 3, 1, 2)).reshape(bsz, -1)

    # fc_mu + fc_logvar + reparameterize fused in one kernel (f32 epilogue)
    latent_dim = params["fc_mu"][0].shape[1]
    noise = jax.random.normal(noise_key, (bsz, latent_dim), jnp.float32)
    mu, logvar, z = pallas_latent_fused(
        ls, params["fc_mu"][0], params["fc_mu"][1],
        params["fc_logvar"][0], params["fc_logvar"][1], noise)

    # decoder input linear, then view as (B, C, H, W) -> NHWC
    d = pallas_matmul_bias_act(z, *params["dec_in"], act="none",
                               out_dtype=jnp.bfloat16)
    d = d.reshape(bsz, ch0, out_size, out_size)
    d = jnp.transpose(d, (0, 2, 3, 1))

    for (w, b) in params["dec"]:
        d = conv_transpose2d_s2(d, w, b, act="leaky_relu")
    wt, bt = params["dec_final_t"]
    d = conv_transpose2d_s2(d, wt, bt, act="leaky_relu")
    wf, bf = params["dec_final_conv"]
    out = conv2d(d, wf, bf, stride=1, pad=1, act="sigmoid",
                 out_dtype=jnp.float32)   # sigmoid fused in kernel, f32 store

    out = jnp.transpose(out, (0, 3, 1, 2))  # back to NCHW
    return out, mu, logvar


if __name__ == "__main__":
    key = jax.random.PRNGKey(0)
    pkey, xkey, nkey = jax.random.split(key, 3)

    B, C, S = 2, 3, 16
    hidden_channels = [8, 16]
    latent_dim = 32

    params, meta = init_params(pkey, C, hidden_channels, latent_dim, S)
    x = jax.random.uniform(xkey, (B, C, S, S), jnp.float32)

    fwd = jax.jit(functools.partial(vae_forward,
                                    out_size=meta["out_size"],
                                    ch0=meta["ch0"]))
    out, mu, logvar = fwd(params, x, nkey)
    jax.block_until_ready((out, mu, logvar))

    assert out.shape == (B, C, S, S), out.shape
    assert mu.shape == (B, latent_dim), mu.shape
    assert logvar.shape == (B, latent_dim), logvar.shape
    assert bool(jnp.all((out >= 0.0) & (out <= 1.0)))
    assert bool(jnp.all(jnp.isfinite(mu))) and bool(jnp.all(jnp.isfinite(logvar)))
    print("KERNEL_OK")
</pallas_src>

<mosaic_0001>
module attributes {stable_mosaic.version = 11 : i64} {
  func.func @_mm_kernel(%arg0: i32, %arg1: i32, %arg2: i32, %arg3: memref<128x128xbf16, #tpu.memory_space<vmem>>, %arg4: memref<128x128xbf16, #tpu.memory_space<vmem>>, %arg5: memref<1x128xf32, #tpu.memory_space<vmem>>, %arg6: memref<128x128xbf16, #tpu.memory_space<vmem>>, %arg7: memref<128x128xf32, #tpu.memory_space<vmem>>) attributes {dimension_semantics = [#tpu.dimension_semantics<parallel>, #tpu.dimension_semantics<parallel>, #tpu.dimension_semantics<arbitrary>], iteration_bounds = array<i64: 1, 1, 1>, scalar_prefetch = 0 : i64, scratch_operands = 1 : i64, tpu.core_type = #tpu.core_type<tc>, window_params = [{transform_indices = @transform_0, window_bounds = array<i64: 128, 128>}, {transform_indices = @transform_1, window_bounds = array<i64: 128, 128>}, {transform_indices = @transform_2, window_bounds = array<i64: 1, 128>}, {transform_indices = @transform_3, window_bounds = array<i64: 128, 128>}]} {
    %c0_i32 = arith.constant 0 : i32
    %0 = arith.cmpi eq, %arg2, %c0_i32 : i32
    %1 = arith.extui %0 : i1 to i32
    %c0_i32_0 = arith.constant 0 : i32
    %2 = arith.cmpi ne, %1, %c0_i32_0 : i32
    scf.if %2 {
      %cst_10 = arith.constant 0.000000e+00 : f32
      %12 = vector.broadcast %cst_10 : f32 to vector<128x128xf32>
      %c0_11 = arith.constant 0 : index
      %c0_12 = arith.constant 0 : index
      %13 = vector.load %arg7[%c0_11, %c0_12] : memref<128x128xf32, #tpu.memory_space<vmem>>, vector<128x128xf32>
      tpu.vector_store %arg7[%c0_11, %c0_12], %12 {strides = array<i32>} : memref<128x128xf32, #tpu.memory_space<vmem>>, vector<128x128xf32>,
    } else {
    }
    %c0 = arith.constant 0 : index
    %c0_1 = arith.constant 0 : index
    %3 = vector.load %arg7[%c0, %c0_1] : memref<128x128xf32, #tpu.memory_space<vmem>>, vector<128x128xf32>
    %c0_2 = arith.constant 0 : index
    %c0_3 = arith.constant 0 : index
    %4 = vector.load %arg3[%c0_2, %c0_3] : memref<128x128xbf16, #tpu.memory_space<vmem>>, vector<128x128xbf16>
    %c0_4 = arith.constant 0 : index
    %c0_5 = arith.constant 0 : index
    %5 = vector.load %arg4[%c0_4, %c0_5] : memref<128x128xbf16, #tpu.memory_space<vmem>>, vector<128x128xbf16>
    %cst = arith.constant dense<0.000000e+00> : vector<128x128xf32>
    %6 = tpu.matmul %4, %5, %cst {dimension_numbers = #tpu.dot_dimension_numbers<[1], [0], [0], [1], [0, 0, 1, 1], [], []>} : vector<128x128xbf16>, vector<128x128xbf16>, vector<128x128xf32> -> vector<128x128xf32>
    %7 = arith.addf %3, %6 : vector<128x128xf32>
    %c0_6 = arith.constant 0 : index
    %c0_7 = arith.constant 0 : index
    %8 = vector.load %arg7[%c0_6, %c0_7] : memref<128x128xf32, #tpu.memory_space<vmem>>, vector<128x128xf32>
    tpu.vector_store %arg7[%c0_6, %c0_7], %7 {strides = array<i32>} : memref<128x128xf32, #tpu.memory_space<vmem>>, vector<128x128xf32>,
    %c0_i32_8 = arith.constant 0 : i32
    %9 = arith.cmpi eq, %arg2, %c0_i32_8 : i32
    %10 = arith.extui %9 : i1 to i32
    %c0_i32_9 = arith.constant 0 : i32
    %11 = arith.cmpi ne, %10, %c0_i32_9 : i32
    scf.if %11 {
      %c0_10 = arith.constant 0 : index
      %c0_11 = arith.constant 0 : index
      %12 = vector.load %arg7[%c0_10, %c0_11] : memref<128x128xf32, #tpu.memory_space<vmem>>, vector<128x128xf32>
      %c0_12 = arith.constant 0 : index
      %c0_13 = arith.constant 0 : index
      %13 = vector.load %arg5[%c0_12, %c0_13] : memref<1x128xf32, #tpu.memory_space<vmem>>, vector<1x128xf32>
      %14 = vector.broadcast %13 : vector<1x128xf32> to vector<128x128xf32>
      %15 = arith.addf %12, %14 : vector<128x128xf32>
      %cst_14 = arith.constant 0.000000e+00 : f32
      %16 = vector.broadcast %cst_14 : f32 to vector<128x128xf32>
      %17 = arith.cmpf oge, %15, %16 : vector<128x128xf32>
      %cst_15 = arith.constant 0.00999999977 : f32
      %18 = vector.broadcast %cst_15 : f32 to vector<128x128xf32>
      %19 = arith.mulf %18, %15 : vector<128x128xf32>
      %20 = arith.select %17, %15, %19 : vector<128x128xi1>, vector<128x128xf32>
      %21 = arith.truncf %20 : vector<128x128xf32> to vector<128x128xbf16>
      %c0_16 = arith.constant 0 : index
      %c0_17 = arith.constant 0 : index
      %22 = vector.load %arg6[%c0_16, %c0_17] : memref<128x128xbf16, #tpu.memory_space<vmem>>, vector<128x128xbf16>
      tpu.vector_store %arg6[%c0_16, %c0_17], %21 {strides = array<i32>} : memref<128x128xbf16, #tpu.memory_space<vmem>>, vector<128x128xbf16>,
    } else {
    }
    return
  }
  func.func @transform_0(%arg0: i32, %arg1: i32, %arg2: i32) -> (i32, i32) {
    %c0_i32 = arith.constant 0 : i32
    return %arg0, %arg2 : i32, i32
  }
  func.func @transform_1(%arg0: i32, %arg1: i32, %arg2: i32) -> (i32, i32) {
    %c0_i32 = arith.constant 0 : i32
    return %arg2, %arg1 : i32, i32
  }
  func.func @transform_2(%arg0: i32, %arg1: i32, %arg2: i32) -> (i32, i32) {
    %c0_i32 = arith.constant 0 : i32
    %c0_i32_0 = arith.constant 0 : i32
    return %c0_i32, %arg1 : i32, i32
  }
  func.func @transform_3(%arg0: i32, %arg1: i32, %arg2: i32) -> (i32, i32) {
    %c0_i32 = arith.constant 0 : i32
    return %arg0, %arg1 : i32, i32
  }
}

module attributes {stable_mosaic.version = 11 : i64} {
  func.func @_mm_kernel(%arg0: i32, %arg1: i32, %arg2: i32, %arg3: memref<32x128xbf16, #tpu.memory_space<vmem>>, %arg4: memref<128x128xbf16, #tpu.memory_space<vmem>>, %arg5: memref<1x128xf32, #tpu.memory_space<vmem>>, %arg6: memref<32x128xbf16, #tpu.memory_space<vmem>>, %arg7: memref<32x128xf32, #tpu.memory_space<vmem>>) attributes {dimension_semantics = [#tpu.dimension_semantics<parallel>, #tpu.dimension_semantics<parallel>, #tpu.dimension_semantics<arbitrary>], iteration_bounds = array<i64: 1, 1, 1>, scalar_prefetch = 0 : i64, scratch_operands = 1 : i64, tpu.core_type = #tpu.core_type<tc>, window_params = [{transform_indices = @transform_0, window_bounds = array<i64: 32, 128>}, {transform_indices = @transform_1, window_bounds = array<i64: 128, 128>}, {transform_indices = @transform_2, window_bounds = array<i64: 1, 128>}, {transform_indices = @transform_3, window_bounds = array<i64: 32, 128>}]} {
    %c0_i32 = arith.constant 0 : i32
    %0 = arith.cmpi eq, %arg2, %c0_i32 : i32
    %1 = arith.extui %0 : i1 to i32
    %c0_i32_0 = arith.constant 0 : i32
    %2 = arith.cmpi ne, %1, %c0_i32_0 : i32
    scf.if %2 {
      %cst_10 = arith.constant 0.000000e+00 : f32
      %12 = vector.broadcast %cst_10 : f32 to vector<32x128xf32>
      %c0_11 = arith.constant 0 : index
      %c0_12 = arith.constant 0 : index
      %13 = vector.load %arg7[%c0_11, %c0_12] : memref<32x128xf32, #tpu.memory_space<vmem>>, vector<32x128xf32>
      tpu.vector_store %arg7[%c0_11, %c0_12], %12 {strides = array<i32>} : memref<32x128xf32, #tpu.memory_space<vmem>>, vector<32x128xf32>,
    } else {
    }
    %c0 = arith.constant 0 : index
    %c0_1 = arith.constant 0 : index
    %3 = vector.load %arg7[%c0, %c0_1] : memref<32x128xf32, #tpu.memory_space<vmem>>, vector<32x128xf32>
    %c0_2 = arith.constant 0 : index
    %c0_3 = arith.constant 0 : index
    %4 = vector.load %arg3[%c0_2, %c0_3] : memref<32x128xbf16, #tpu.memory_space<vmem>>, vector<32x128xbf16>
    %c0_4 = arith.constant 0 : index
    %c0_5 = arith.constant 0 : index
    %5 = vector.load %arg4[%c0_4, %c0_5] : memref<128x128xbf16, #tpu.memory_space<vmem>>, vector<128x128xbf16>
    %cst = arith.constant dense<0.000000e+00> : vector<32x128xf32>
    %6 = tpu.matmul %4, %5, %cst {dimension_numbers = #tpu.dot_dimension_numbers<[1], [0], [0], [1], [0, 0, 1, 1], [], []>} : vector<32x128xbf16>, vector<128x128xbf16>, vector<32x128xf32> -> vector<32x128xf32>
    %7 = arith.addf %3, %6 : vector<32x128xf32>
    %c0_6 = arith.constant 0 : index
    %c0_7 = arith.constant 0 : index
    %8 = vector.load %arg7[%c0_6, %c0_7] : memref<32x128xf32, #tpu.memory_space<vmem>>, vector<32x128xf32>
    tpu.vector_store %arg7[%c0_6, %c0_7], %7 {strides = array<i32>} : memref<32x128xf32, #tpu.memory_space<vmem>>, vector<32x128xf32>,
    %c0_i32_8 = arith.constant 0 : i32
    %9 = arith.cmpi eq, %arg2, %c0_i32_8 : i32
    %10 = arith.extui %9 : i1 to i32
    %c0_i32_9 = arith.constant 0 : i32
    %11 = arith.cmpi ne, %10, %c0_i32_9 : i32
    scf.if %11 {
      %c0_10 = arith.constant 0 : index
      %c0_11 = arith.constant 0 : index
      %12 = vector.load %arg7[%c0_10, %c0_11] : memref<32x128xf32, #tpu.memory_space<vmem>>, vector<32x128xf32>
      %c0_12 = arith.constant 0 : index
      %c0_13 = arith.constant 0 : index
      %13 = vector.load %arg5[%c0_12, %c0_13] : memref<1x128xf32, #tpu.memory_space<vmem>>, vector<1x128xf32>
      %14 = vector.broadcast %13 : vector<1x128xf32> to vector<32x128xf32>
      %15 = arith.addf %12, %14 : vector<32x128xf32>
      %cst_14 = arith.constant 0.000000e+00 : f32
      %16 = vector.broadcast %cst_14 : f32 to vector<32x128xf32>
      %17 = arith.cmpf oge, %15, %16 : vector<32x128xf32>
      %cst_15 = arith.constant 0.00999999977 : f32
      %18 = vector.broadcast %cst_15 : f32 to vector<32x128xf32>
      %19 = arith.mulf %18, %15 : vector<32x128xf32>
      %20 = arith.select %17, %15, %19 : vector<32x128xi1>, vector<32x128xf32>
      %21 = arith.truncf %20 : vector<32x128xf32> to vector<32x128xbf16>
      %c0_16 = arith.constant 0 : index
      %c0_17 = arith.constant 0 : index
      %22 = vector.load %arg6[%c0_16, %c0_17] : memref<32x128xbf16, #tpu.memory_space<vmem>>, vector<32x128xbf16>
      tpu.vector_store %arg6[%c0_16, %c0_17], %21 {strides = array<i32>} : memref<32x128xbf16, #tpu.memory_space<vmem>>, vector<32x128xbf16>,
    } else {
    }
    return
  }
  func.func @transform_0(%arg0: i32, %arg1: i32, %arg2: i32) -> (i32, i32) {
    %c0_i32 = arith.constant 0 : i32
    return %arg0, %arg2 : i32, i32
  }
  func.func @transform_1(%arg0: i32, %arg1: i32, %arg2: i32) -> (i32, i32) {
    %c0_i32 = arith.constant 0 : i32
    return %arg2, %arg1 : i32, i32
  }
  func.func @transform_2(%arg0: i32, %arg1: i32, %arg2: i32) -> (i32, i32) {
    %c0_i32 = arith.constant 0 : i32
    %c0_i32_0 = arith.constant 0 : i32
    return %c0_i32, %arg1 : i32, i32
  }
  func.func @transform_3(%arg0: i32, %arg1: i32, %arg2: i32) -> (i32, i32) {
    %c0_i32 = arith.constant 0 : i32
    return %arg0, %arg1 : i32, i32
  }
}

module attributes {stable_mosaic.version = 11 : i64} {
  func.func @_latent_kernel(%arg0: i32, %arg1: memref<8x256xbf16, #tpu.memory_space<vmem>>, %arg2: memref<256x256xbf16, #tpu.memory_space<vmem>>, %arg3: memref<1x256xf32, #tpu.memory_space<vmem>>, %arg4: memref<8x128xf32, #tpu.memory_space<vmem>>, %arg5: memref<8x128xf32, #tpu.memory_space<vmem>>, %arg6: memref<8x128xf32, #tpu.memory_space<vmem>>, %arg7: memref<8x128xf32, #tpu.memory_space<vmem>>, %arg8: memref<8x256xf32, #tpu.memory_space<vmem>>) attributes {dimension_semantics = [#tpu.dimension_semantics<arbitrary>], iteration_bounds = array<i64: 1>, scalar_prefetch = 0 : i64, scratch_operands = 1 : i64, tpu.core_type = #tpu.core_type<tc>, window_params = [{transform_indices = @transform_0, window_bounds = array<i64: 8, 256>}, {transform_indices = @transform_1, window_bounds = array<i64: 256, 256>}, {pipeline_mode = #tpu.pipeline_mode<synchronous>, transform_indices = @transform_2, window_bounds = array<i64: 1, 256>}, {pipeline_mode = #tpu.pipeline_mode<synchronous>, transform_indices = @transform_3, window_bounds = array<i64: 8, 128>}, {pipeline_mode = #tpu.pipeline_mode<synchronous>, transform_indices = @transform_4, window_bounds = array<i64: 8, 128>}, {pipeline_mode = #tpu.pipeline_mode<synchronous>, transform_indices = @transform_5, window_bounds = array<i64: 8, 128>}, {pipeline_mode = #tpu.pipeline_mode<synchronous>, transform_indices = @transform_6, window_bounds = array<i64: 8, 128>}]} {
    %c0_i32 = arith.constant 0 : i32
    %0 = arith.cmpi eq, %arg0, %c0_i32 : i32
    %1 = arith.extui %0 : i1 to i32
    %c0_i32_0 = arith.constant 0 : i32
    %2 = arith.cmpi ne, %1, %c0_i32_0 : i32
    scf.if %2 {
      %cst_10 = arith.constant 0.000000e+00 : f32
      %12 = vector.broadcast %cst_10 : f32 to vector<8x256xf32>
      %c0_11 = arith.constant 0 : index
      %c0_12 = arith.constant 0 : index
      %13 = vector.load %arg8[%c0_11, %c0_12] : memref<8x256xf32, #tpu.memory_space<vmem>>, vector<8x256xf32>
      tpu.vector_store %arg8[%c0_11, %c0_12], %12 {strides = array<i32>} : memref<8x256xf32, #tpu.memory_space<vmem>>, vector<8x256xf32>,
    } else {
    }
    %c0 = arith.constant 0 : index
    %c0_1 = arith.constant 0 : index
    %3 = vector.load %arg8[%c0, %c0_1] : memref<8x256xf32, #tpu.memory_space<vmem>>, vector<8x256xf32>
    %c0_2 = arith.constant 0 : index
    %c0_3 = arith.constant 0 : index
    %4 = vector.load %arg1[%c0_2, %c0_3] : memref<8x256xbf16, #tpu.memory_space<vmem>>, vector<8x256xbf16>
    %c0_4 = arith.constant 0 : index
    %c0_5 = arith.constant 0 : index
    %5 = vector.load %arg2[%c0_4, %c0_5] : memref<256x256xbf16, #tpu.memory_space<vmem>>, vector<256x256xbf16>
    %cst = arith.constant dense<0.000000e+00> : vector<8x256xf32>
    %6 = tpu.matmul %4, %5, %cst {dimension_numbers = #tpu.dot_dimension_numbers<[1], [0], [0], [1], [0, 0, 1, 1], [], []>} : vector<8x256xbf16>, vector<256x256xbf16>, vector<8x256xf32> -> vector<8x256xf32>
    %7 = arith.addf %3, %6 : vector<8x256xf32>
    %c0_6 = arith.constant 0 : index
    %c0_7 = arith.constant 0 : index
    %8 = vector.load %arg8[%c0_6, %c0_7] : memref<8x256xf32, #tpu.memory_space<vmem>>, vector<8x256xf32>
    tpu.vector_store %arg8[%c0_6, %c0_7], %7 {strides = array<i32>} : memref<8x256xf32, #tpu.memory_space<vmem>>, vector<8x256xf32>,
    %c0_i32_8 = arith.constant 0 : i32
    %9 = arith.cmpi eq, %arg0, %c0_i32_8 : i32
    %10 = arith.extui %9 : i1 to i32
    %c0_i32_9 = arith.constant 0 : i32
    %11 = arith.cmpi ne, %10, %c0_i32_9 : i32
    scf.if %11 {
      %c0_10 = arith.constant 0 : index
      %c0_11 = arith.constant 0 : index
      %12 = vector.load %arg8[%c0_10, %c0_11] : memref<8x256xf32, #tpu.memory_space<vmem>>, vector<8x256xf32>
      %c0_12 = arith.constant 0 : index
      %c0_13 = arith.constant 0 : index
      %13 = vector.load %arg3[%c0_12, %c0_13] : memref<1x256xf32, #tpu.memory_space<vmem>>, vector<1x256xf32>
      %14 = vector.broadcast %13 : vector<1x256xf32> to vector<8x256xf32>
      %15 = arith.addf %12, %14 : vector<8x256xf32>
      %16 = vector.extract_strided_slice %15 {offsets = [0, 0], sizes = [8, 128], strides = [1, 1]} : vector<8x256xf32> to vector<8x128xf32>
      %17 = vector.extract_strided_slice %15 {offsets = [0, 128], sizes = [8, 128], strides = [1, 1]} : vector<8x256xf32> to vector<8x128xf32>
      %c0_14 = arith.constant 0 : index
      %c0_15 = arith.constant 0 : index
      %18 = vector.load %arg5[%c0_14, %c0_15] : memref<8x128xf32, #tpu.memory_space<vmem>>, vector<8x128xf32>
      tpu.vector_store %arg5[%c0_14, %c0_15], %16 {strides = array<i32>} : memref<8x128xf32, #tpu.memory_space<vmem>>, vector<8x128xf32>,
      %c0_16 = arith.constant 0 : index
      %c0_17 = arith.constant 0 : index
      %19 = vector.load %arg6[%c0_16, %c0_17] : memref<8x128xf32, #tpu.memory_space<vmem>>, vector<8x128xf32>
      tpu.vector_store %arg6[%c0_16, %c0_17], %17 {strides = array<i32>} : memref<8x128xf32, #tpu.memory_space<vmem>>, vector<8x128xf32>,
      %c0_18 = arith.constant 0 : index
      %c0_19 = arith.constant 0 : index
      %20 = vector.load %arg4[%c0_18, %c0_19] : memref<8x128xf32, #tpu.memory_space<vmem>>, vector<8x128xf32>
      %cst_20 = arith.constant 5.000000e-01 : f32
      %21 = vector.broadcast %cst_20 : f32 to vector<8x128xf32>
      %22 = arith.mulf %21, %17 : vector<8x128xf32>
      %23 = math.exp %22 : vector<8x128xf32>
      %24 = arith.mulf %20, %23 : vector<8x128xf32>
      %25 = arith.addf %16, %24 : vector<8x128xf32>
      %c0_21 = arith.constant 0 : index
      %c0_22 = arith.constant 0 : index
      %26 = vector.load %arg7[%c0_21, %c0_22] : memref<8x128xf32, #tpu.memory_space<vmem>>, vector<8x128xf32>
      tpu.vector_store %arg7[%c0_21, %c0_22], %25 {strides = array<i32>} : memref<8x128xf32, #tpu.memory_space<vmem>>, vector<8x128xf32>,
    } else {
    }
    return
  }
  func.func @transform_0(%arg0: i32) -> (i32, i32) {
    %c0_i32 = arith.constant 0 : i32
    %c0_i32_0 = arith.constant 0 : i32
    return %c0_i32, %arg0 : i32, i32
  }
  func.func @transform_1(%arg0: i32) -> (i32, i32) {
    %c0_i32 = arith.constant 0 : i32
    %c0_i32_0 = arith.constant 0 : i32
    return %arg0, %c0_i32 : i32, i32
  }
  func.func @transform_2(%arg0: i32) -> (i32, i32) {
    %c0_i32 = arith.constant 0 : i32
    %c0_i32_0 = arith.constant 0 : i32
    %c0_i32_1 = arith.constant 0 : i32
    return %c0_i32, %c0_i32_0 : i32, i32
  }
  func.func @transform_3(%arg0: i32) -> (i32, i32) {
    %c0_i32 = arith.constant 0 : i32
    %c0_i32_0 = arith.constant 0 : i32
    %c0_i32_1 = arith.constant 0 : i32
    return %c0_i32, %c0_i32_0 : i32, i32
  }
  func.func @transform_4(%arg0: i32) -> (i32, i32) {
    %c0_i32 = arith.constant 0 : i32
    %c0_i32_0 = arith.constant 0 : i32
    %c0_i32_1 = arith.constant 0 : i32
    return %c0_i32, %c0_i32_0 : i32, i32
  }
  func.func @transform_5(%arg0: i32) -> (i32, i32) {
    %c0_i32 = arith.constant 0 : i32
    %c0_i32_0 = arith.constant 0 : i32
    %c0_i32_1 = arith.constant 0 : i32
    return %c0_i32, %c0_i32_0 : i32, i32
  }
  func.func @transform_6(%arg0: i32) -> (i32, i32) {
    %c0_i32 = arith.constant 0 : i32
    %c0_i32_0 = arith.constant 0 : i32
    %c0_i32_1 = arith.constant 0 : i32
    return %c0_i32, %c0_i32_0 : i32, i32
  }
}

module attributes {stable_mosaic.version = 11 : i64} {
  func.func @_mm_kernel(%arg0: i32, %arg1: i32, %arg2: i32, %arg3: memref<8x128xbf16, #tpu.memory_space<vmem>>, %arg4: memref<128x256xbf16, #tpu.memory_space<vmem>>, %arg5: memref<1x256xf32, #tpu.memory_space<vmem>>, %arg6: memref<8x256xbf16, #tpu.memory_space<vmem>>, %arg7: memref<8x256xf32, #tpu.memory_space<vmem>>) attributes {dimension_semantics = [#tpu.dimension_semantics<parallel>, #tpu.dimension_semantics<parallel>, #tpu.dimension_semantics<arbitrary>], iteration_bounds = array<i64: 1, 1, 1>, scalar_prefetch = 0 : i64, scratch_operands = 1 : i64, tpu.core_type = #tpu.core_type<tc>, window_params = [{transform_indices = @transform_0, window_bounds = array<i64: 8, 128>}, {transform_indices = @transform_1, window_bounds = array<i64: 128, 256>}, {transform_indices = @transform_2, window_bounds = array<i64: 1, 256>}, {transform_indices = @transform_3, window_bounds = array<i64: 8, 256>}]} {
    %c0_i32 = arith.constant 0 : i32
    %0 = arith.cmpi eq, %arg2, %c0_i32 : i32
    %1 = arith.extui %0 : i1 to i32
    %c0_i32_0 = arith.constant 0 : i32
    %2 = arith.cmpi ne, %1, %c0_i32_0 : i32
    scf.if %2 {
      %cst_10 = arith.constant 0.000000e+00 : f32
      %12 = vector.broadcast %cst_10 : f32 to vector<8x256xf32>
      %c0_11 = arith.constant 0 : index
      %c0_12 = arith.constant 0 : index
      %13 = vector.load %arg7[%c0_11, %c0_12] : memref<8x256xf32, #tpu.memory_space<vmem>>, vector<8x256xf32>
      tpu.vector_store %arg7[%c0_11, %c0_12], %12 {strides = array<i32>} : memref<8x256xf32, #tpu.memory_space<vmem>>, vector<8x256xf32>,
    } else {
    }
    %c0 = arith.constant 0 : index
    %c0_1 = arith.constant 0 : index
    %3 = vector.load %arg7[%c0, %c0_1] : memref<8x256xf32, #tpu.memory_space<vmem>>, vector<8x256xf32>
    %c0_2 = arith.constant 0 : index
    %c0_3 = arith.constant 0 : index
    %4 = vector.load %arg3[%c0_2, %c0_3] : memref<8x128xbf16, #tpu.memory_space<vmem>>, vector<8x128xbf16>
    %c0_4 = arith.constant 0 : index
    %c0_5 = arith.constant 0 : index
    %5 = vector.load %arg4[%c0_4, %c0_5] : memref<128x256xbf16, #tpu.memory_space<vmem>>, vector<128x256xbf16>
    %cst = arith.constant dense<0.000000e+00> : vector<8x256xf32>
    %6 = tpu.matmul %4, %5, %cst {dimension_numbers = #tpu.dot_dimension_numbers<[1], [0], [0], [1], [0, 0, 1, 1], [], []>} : vector<8x128xbf16>, vector<128x256xbf16>, vector<8x256xf32> -> vector<8x256xf32>
    %7 = arith.addf %3, %6 : vector<8x256xf32>
    %c0_6 = arith.constant 0 : index
    %c0_7 = arith.constant 0 : index
    %8 = vector.load %arg7[%c0_6, %c0_7] : memref<8x256xf32, #tpu.memory_space<vmem>>, vector<8x256xf32>
    tpu.vector_store %arg7[%c0_6, %c0_7], %7 {strides = array<i32>} : memref<8x256xf32, #tpu.memory_space<vmem>>, vector<8x256xf32>,
    %c0_i32_8 = arith.constant 0 : i32
    %9 = arith.cmpi eq, %arg2, %c0_i32_8 : i32
    %10 = arith.extui %9 : i1 to i32
    %c0_i32_9 = arith.constant 0 : i32
    %11 = arith.cmpi ne, %10, %c0_i32_9 : i32
    scf.if %11 {
      %c0_10 = arith.constant 0 : index
      %c0_11 = arith.constant 0 : index
      %12 = vector.load %arg7[%c0_10, %c0_11] : memref<8x256xf32, #tpu.memory_space<vmem>>, vector<8x256xf32>
      %c0_12 = arith.constant 0 : index
      %c0_13 = arith.constant 0 : index
      %13 = vector.load %arg5[%c0_12, %c0_13] : memref<1x256xf32, #tpu.memory_space<vmem>>, vector<1x256xf32>
      %14 = vector.broadcast %13 : vector<1x256xf32> to vector<8x256xf32>
      %15 = arith.addf %12, %14 : vector<8x256xf32>
      %16 = arith.truncf %15 : vector<8x256xf32> to vector<8x256xbf16>
      %c0_14 = arith.constant 0 : index
      %c0_15 = arith.constant 0 : index
      %17 = vector.load %arg6[%c0_14, %c0_15] : memref<8x256xbf16, #tpu.memory_space<vmem>>, vector<8x256xbf16>
      tpu.vector_store %arg6[%c0_14, %c0_15], %16 {strides = array<i32>} : memref<8x256xbf16, #tpu.memory_space<vmem>>, vector<8x256xbf16>,
    } else {
    }
    return
  }
  func.func @transform_0(%arg0: i32, %arg1: i32, %arg2: i32) -> (i32, i32) {
    %c0_i32 = arith.constant 0 : i32
    return %arg0, %arg2 : i32, i32
  }
  func.func @transform_1(%arg0: i32, %arg1: i32, %arg2: i32) -> (i32, i32) {
    %c0_i32 = arith.constant 0 : i32
    return %arg2, %arg1 : i32, i32
  }
  func.func @transform_2(%arg0: i32, %arg1: i32, %arg2: i32) -> (i32, i32) {
    %c0_i32 = arith.constant 0 : i32
    %c0_i32_0 = arith.constant 0 : i32
    return %c0_i32, %arg1 : i32, i32
  }
  func.func @transform_3(%arg0: i32, %arg1: i32, %arg2: i32) -> (i32, i32) {
    %c0_i32 = arith.constant 0 : i32
    return %arg0, %arg1 : i32, i32
  }
}

module attributes {stable_mosaic.version = 11 : i64} {
  func.func @_mm_kernel(%arg0: i32, %arg1: i32, %arg2: i32, %arg3: memref<256x128xbf16, #tpu.memory_space<vmem>>, %arg4: memref<128x128xbf16, #tpu.memory_space<vmem>>, %arg5: memref<1x128xf32, #tpu.memory_space<vmem>>, %arg6: memref<256x128xf32, #tpu.memory_space<vmem>>, %arg7: memref<256x128xf32, #tpu.memory_space<vmem>>) attributes {dimension_semantics = [#tpu.dimension_semantics<parallel>, #tpu.dimension_semantics<parallel>, #tpu.dimension_semantics<arbitrary>], iteration_bounds = array<i64: 2, 1, 1>, scalar_prefetch = 0 : i64, scratch_operands = 1 : i64, tpu.core_type = #tpu.core_type<tc>, window_params = [{transform_indices = @transform_0, window_bounds = array<i64: 256, 128>}, {transform_indices = @transform_1, window_bounds = array<i64: 128, 128>}, {transform_indices = @transform_2, window_bounds = array<i64: 1, 128>}, {transform_indices = @transform_3, window_bounds = array<i64: 256, 128>}]} {
    %c0_i32 = arith.constant 0 : i32
    %0 = arith.cmpi eq, %arg2, %c0_i32 : i32
    %1 = arith.extui %0 : i1 to i32
    %c0_i32_0 = arith.constant 0 : i32
    %2 = arith.cmpi ne, %1, %c0_i32_0 : i32
    scf.if %2 {
      %cst_10 = arith.constant 0.000000e+00 : f32
      %12 = vector.broadcast %cst_10 : f32 to vector<256x128xf32>
      %c0_11 = arith.constant 0 : index
      %c0_12 = arith.constant 0 : index
      %13 = vector.load %arg7[%c0_11, %c0_12] : memref<256x128xf32, #tpu.memory_space<vmem>>, vector<256x128xf32>
      tpu.vector_store %arg7[%c0_11, %c0_12], %12 {strides = array<i32>} : memref<256x128xf32, #tpu.memory_space<vmem>>, vector<256x128xf32>,
    } else {
    }
    %c0 = arith.constant 0 : index
    %c0_1 = arith.constant 0 : index
    %3 = vector.load %arg7[%c0, %c0_1] : memref<256x128xf32, #tpu.memory_space<vmem>>, vector<256x128xf32>
    %c0_2 = arith.constant 0 : index
    %c0_3 = arith.constant 0 : index
    %4 = vector.load %arg3[%c0_2, %c0_3] : memref<256x128xbf16, #tpu.memory_space<vmem>>, vector<256x128xbf16>
    %c0_4 = arith.constant 0 : index
    %c0_5 = arith.constant 0 : index
    %5 = vector.load %arg4[%c0_4, %c0_5] : memref<128x128xbf16, #tpu.memory_space<vmem>>, vector<128x128xbf16>
    %cst = arith.constant dense<0.000000e+00> : vector<256x128xf32>
    %6 = tpu.matmul %4, %5, %cst {dimension_numbers = #tpu.dot_dimension_numbers<[1], [0], [0], [1], [0, 0, 1, 1], [], []>} : vector<256x128xbf16>, vector<128x128xbf16>, vector<256x128xf32> -> vector<256x128xf32>
    %7 = arith.addf %3, %6 : vector<256x128xf32>
    %c0_6 = arith.constant 0 : index
    %c0_7 = arith.constant 0 : index
    %8 = vector.load %arg7[%c0_6, %c0_7] : memref<256x128xf32, #tpu.memory_space<vmem>>, vector<256x128xf32>
    tpu.vector_store %arg7[%c0_6, %c0_7], %7 {strides = array<i32>} : memref<256x128xf32, #tpu.memory_space<vmem>>, vector<256x128xf32>,
    %c0_i32_8 = arith.constant 0 : i32
    %9 = arith.cmpi eq, %arg2, %c0_i32_8 : i32
    %10 = arith.extui %9 : i1 to i32
    %c0_i32_9 = arith.constant 0 : i32
    %11 = arith.cmpi ne, %10, %c0_i32_9 : i32
    scf.if %11 {
      %c0_10 = arith.constant 0 : index
      %c0_11 = arith.constant 0 : index
      %12 = vector.load %arg7[%c0_10, %c0_11] : memref<256x128xf32, #tpu.memory_space<vmem>>, vector<256x128xf32>
      %c0_12 = arith.constant 0 : index
      %c0_13 = arith.constant 0 : index
      %13 = vector.load %arg5[%c0_12, %c0_13] : memref<1x128xf32, #tpu.memory_space<vmem>>, vector<1x128xf32>
      %14 = vector.broadcast %13 : vector<1x128xf32> to vector<256x128xf32>
      %15 = arith.addf %12, %14 : vector<256x128xf32>
      %16 = arith.negf %15 : vector<256x128xf32>
      %17 = math.exp %16 : vector<256x128xf32>
      %cst_14 = arith.constant 1.000000e+00 : f32
      %18 = vector.broadcast %cst_14 : f32 to vector<256x128xf32>
      %19 = arith.addf %18, %17 : vector<256x128xf32>
      %20 = arith.divf %18, %19 : vector<256x128xf32>
      %c0_15 = arith.constant 0 : index
      %c0_16 = arith.constant 0 : index
      %21 = vector.load %arg6[%c0_15, %c0_16] : memref<256x128xf32, #tpu.memory_space<vmem>>, vector<256x128xf32>
      tpu.vector_store %arg6[%c0_15, %c0_16], %20 {strides = array<i32>} : memref<256x128xf32, #tpu.memory_space<vmem>>, vector<256x128xf32>,
    } else {
    }
    return
  }
  func.func @transform_0(%arg0: i32, %arg1: i32, %arg2: i32) -> (i32, i32) {
    %c0_i32 = arith.constant 0 : i32
    return %arg0, %arg2 : i32, i32
  }
  func.func @transform_1(%arg0: i32, %arg1: i32, %arg2: i32) -> (i32, i32) {
    %c0_i32 = arith.constant 0 : i32
    return %arg2, %arg1 : i32, i32
  }
  func.func @transform_2(%arg0: i32, %arg1: i32, %arg2: i32) -> (i32, i32) {
    %c0_i32 = arith.constant 0 : i32
    %c0_i32_0 = arith.constant 0 : i32
    return %c0_i32, %arg1 : i32, i32
  }
  func.func @transform_3(%arg0: i32, %arg1: i32, %arg2: i32) -> (i32, i32) {
    %c0_i32 = arith.constant 0 : i32
    return %arg0, %arg1 : i32, i32
  }
}

</mosaic_0001>

<bundles_post_ra>
// kernel: vae_forward.7
= control target key start
LH: loop header
LB: loop body
LE: loop exit
PB: predicated region body
PF: predicated region fallthrough
CT: control target
= control target key end

     0   :  { %s775_s1 = inlined_call_operand.vmem [shape: bf16[128,128], index: 1, kind: input, shape index: {}]   ;;  %s776_s0 = inlined_call_operand.vmem [shape: bf16[128,128], index: 0, kind: input, shape index: {}]   ;;  %s777_s2 = inlined_call_operand.vmem [shape: f32[1,128], index: 2, kind: input, shape index: {}]   ;;  %s778_s3 = inlined_call_operand.vmem [shape: bf16[128,128], index: 3, kind: output, shape index: {}]  }
   0x1   :  { %v642_v0 = vld [vmem:[%s775_s1] sm:$0xff]   ;;  %v643_v1 = vld [vmem:[%s775_s1 + $0x8] sm:$0xff]   ;;  %v644_v2 = vld [vmem:[%s775_s1 + $0x10] sm:$0xff]  }
   0x2   :  { %594 = vmatprep.subr.bf16.mxu0 %v642_v0  ;;  %626 = vmatprep.subr.bf16.mxu1 %v642_v0  ;;  %v645_v3 = vld [vmem:[%s775_s1 + $0x18] sm:$0xff]   ;;  %v650_v4 = vld [vmem:[%s776_s0] sm:$0xff]   ;;  %v647_v7 = vld [vmem:[%s775_s1 + $0x28] sm:$0xff]  }
   0x3   :  { %595 = vmatpush3.bf16.msra.mxu0 %v642_v0  ;;  %634 = vmatpush3.bf16.msra.mxu1 %v642_v0  ;;  %v651_v5 = vld [vmem:[%s776_s0 + $0x20] sm:$0xff]   ;;  %v648_v8 = vld [vmem:[%s775_s1 + $0x30] sm:$0xff]   ;;  %v649_v9 = vld [vmem:[%s775_s1 + $0x38] sm:$0xff]  }
   0x4   :  { %596 = vmatprep.subr.bf16.mxu0 %v643_v1  ;;  %627 = vmatprep.subr.bf16.mxu1 %v643_v1  ;;  %v646_v6 = vld [vmem:[%s775_s1 + $0x20] sm:$0xff]   ;;  %v652_v10 = vld [vmem:[%s776_s0 + $0x8] sm:$0xff]   ;;  %v654_v12 = vld [vmem:[%s776_s0 + $0x10] sm:$0xff]  }
   0x5   :  { %610 = vmatprep.mubr.bf16.mxu0 %v650_v4  ;;  %618 = vmatprep.mubr.bf16.mxu1 %v651_v5  ;;  %v653_v11 = vld [vmem:[%s776_s0 + $0x28] sm:$0xff]   ;;  %v655_v13 = vld [vmem:[%s776_s0 + $0x30] sm:$0xff]   ;;  %v656_v14 = vld [vmem:[%s776_s0 + $0x18] sm:$0xff]  }
   0x6   :  { %v657_v15 = vld [vmem:[%s776_s0 + $0x38] sm:$0xff]   ;;  %v729_v16 = vld [vmem:[%s777_s2] ss:$0 sm:$0xff] }
   0x7   :  { %597 = vmatpush3.bf16.msra.mxu0 %v643_v1  ;;  %635 = vmatpush3.bf16.msra.mxu1 %v643_v1 }
   0x8   :  { %598 = vmatprep.subr.bf16.mxu0 %v644_v2  ;;  %628 = vmatprep.subr.bf16.mxu1 %v644_v2 }
   0xb   :  { %599 = vmatpush3.bf16.msra.mxu0 %v644_v2  ;;  %636 = vmatpush3.bf16.msra.mxu1 %v644_v2 }
   0xc   :  { %600 = vmatprep.subr.bf16.mxu0 %v645_v3  ;;  %629 = vmatprep.subr.bf16.mxu1 %v645_v3 }
   0xf   :  { %601 = vmatpush3.bf16.msra.mxu0 %v645_v3  ;;  %637 = vmatpush3.bf16.msra.mxu1 %v645_v3 }
  0x10   :  { %602 = vmatprep.subr.bf16.mxu0 %v646_v6  ;;  %630 = vmatprep.subr.bf16.mxu1 %v646_v6 }
  0x13   :  { %603 = vmatpush3.bf16.msra.mxu0 %v646_v6  ;;  %638 = vmatpush3.bf16.msra.mxu1 %v646_v6 }
  0x14   :  { %604 = vmatprep.subr.bf16.mxu0 %v647_v7  ;;  %631 = vmatprep.subr.bf16.mxu1 %v647_v7 }
  0x17   :  { %605 = vmatpush3.bf16.msra.mxu0 %v647_v7  ;;  %639 = vmatpush3.bf16.msra.mxu1 %v647_v7 }
  0x18   :  { %606 = vmatprep.subr.bf16.mxu0 %v648_v8  ;;  %632 = vmatprep.subr.bf16.mxu1 %v648_v8 }
  0x1b   :  { %607 = vmatpush3.bf16.msra.mxu0 %v648_v8  ;;  %640 = vmatpush3.bf16.msra.mxu1 %v648_v8 }
  0x1c   :  { %608 = vmatprep.subr.bf16.mxu0 %v649_v9  ;;  %633 = vmatprep.subr.bf16.mxu1 %v649_v9 }
  0x1f   :  { %609 = vmatpush3.bf16.msra.mxu0 %v649_v9  ;;  %641 = vmatpush3.bf16.msra.mxu1 %v649_v9 }
  0x22   :  { %611 = vmatmul.mubr.bf16.vlgmr.msra.gmra.mrb[0].mxu0 %v652_v10  ;;  %619 = vmatmul.mubr.bf16.vlgmr.msra.gmra.mrb[0].mxu1 %v653_v11 }
  0x23   :  { %614 = vmatprep.mubr.bf16.mxu0 %v654_v12  ;;  %622 = vmatprep.mubr.bf16.mxu1 %v655_v13 }
  0x2a   :  { %615 = vmatmul.mubr.bf16.gmra.mrb[4].mxu0 %v656_v14  ;;  %623 = vmatmul.mubr.bf16.gmra.mrb[4].mxu1 %v657_v15 }
  0xf5   :  { %v612_v17 = vpop.f32.mrb[0].mxu0  ;;  %v620_v18 = vpop.f32.mrb[0].mxu1 }
  0xf6   :  { %v336_v19 = vadd.f32 %v612_v17, %v729_v16  ;;  %v344_v20 = vadd.f32 %v620_v18, %v729_v16  ;;  %v213_v21 = vpop.f32.mrb[1].mxu0  ;;  %v245_v22 = vpop.f32.mrb[1].mxu1 }
  0xf7   :  { %v334_v23 = vadd.f32 %v729_v16, %v213_v21  ;;  %v342_v24 = vadd.f32 %v729_v16, %v245_v22  ;;  %v613_v25 = vpop.f32.mrb[2].mxu0  ;;  %v621_v26 = vpop.f32.mrb[2].mxu1 }
  0xf8   :  { %vm352_vm0 = vcmp.ge.f32.partialorder %v336_v19, 0.0  ;;  %v368_v27 = vmul.f32 0.01, %v336_v19  ;;  %vm360_vm1 = vcmp.ge.f32.partialorder %v344_v20, 0.0  ;;  %v376_v28 = vmul.f32 0.01, %v344_v20 }
  0xf9   :  { %vm350_vm2 = vcmp.ge.f32.partialorder %v334_v23, 0.0  ;;  %v366_v29 = vmul.f32 0.01, %v334_v23  ;;  %vm358_vm3 = vcmp.ge.f32.partialorder %v342_v24, 0.0  ;;  %v374_v30 = vmul.f32 0.01, %v342_v24 }
  0xfa   :  { %v337_v31 = vadd.f32 %v613_v25, %v729_v16  ;;  %v345_v32 = vadd.f32 %v621_v26, %v729_v16  ;;  %v216_v33 = vpop.f32.mrb[3].mxu0  ;;  %v248_v34 = vpop.f32.mrb[3].mxu1  ;;  %v384_v35 = vsel %vm352_vm0, %v336_v19, %v368_v27  ;;  %v392_v36 = vsel %vm360_vm1, %v344_v20, %v376_v28 }
  0xfb   :  { %v335_v37 = vadd.f32 %v729_v16, %v216_v33  ;;  %v343_v38 = vadd.f32 %v729_v16, %v248_v34  ;;  %v382_v43 = vsel %vm350_vm2, %v334_v23, %v366_v29  ;;  %v390_v44 = vsel %vm358_vm3, %v342_v24, %v374_v30 }
  0xfc   :  { %vm353_vm4 = vcmp.ge.f32.partialorder %v337_v31, 0.0  ;;  %v369_v39 = vmul.f32 0.01, %v337_v31  ;;  %vm361_vm5 = vcmp.ge.f32.partialorder %v345_v32, 0.0  ;;  %v377_v40 = vmul.f32 0.01, %v345_v32 }
  0xfd   :  { %vm351_vm6 = vcmp.ge.f32.partialorder %v335_v37, 0.0  ;;  %v367_v41 = vmul.f32 0.01, %v335_v37  ;;  %vm359_vm7 = vcmp.ge.f32.partialorder %v343_v38, 0.0  ;;  %v375_v42 = vmul.f32 0.01, %v343_v38 }
  0xfe   :  { %v385_v45 = vsel %vm353_vm4, %v337_v31, %v369_v39  ;;  %v393_v46 = vsel %vm361_vm5, %v345_v32, %v377_v40  ;;  %v616_v47 = vpop.f32.mrb[4].mxu0  ;;  %v624_v48 = vpop.f32.mrb[4].mxu1 }
  0xff   :  { %v539_v49 = vpack.c.bf16 %v385_v45, %v384_v35  ;;  %v559_v50 = vpack.c.bf16 %v393_v46, %v392_v36  ;;  %v383_v51 = vsel %vm351_vm6, %v335_v37, %v367_v41  ;;  %v391_v52 = vsel %vm359_vm7, %v343_v38, %v375_v42  ;;  %v229_v53 = vpop.f32.mrb[5].mxu0  ;;  %v261_v54 = vpop.f32.mrb[5].mxu1 }
 0x100   :  { %v534_v55 = vpack.c.bf16 %v383_v51, %v382_v43  ;;  %v554_v56 = vpack.c.bf16 %v391_v52, %v390_v44  ;;  %v340_v57 = vadd.f32 %v616_v47, %v729_v16  ;;  %v348_v58 = vadd.f32 %v624_v48, %v729_v16  ;;  %v617_v59 = vpop.f32.mrb[6].mxu0  ;;  %v625_v60 = vpop.f32.mrb[6].mxu1 }
 0x101   :  { %571 = vst [vmem:[%s778_s3 + $0x8] sm:$0xff] %v539_v49   ;;  %575 = vst [vmem:[%s778_s3 + $0x28] sm:$0xff] %v559_v50   ;;  %v338_v61 = vadd.f32 %v729_v16, %v229_v53  ;;  %v346_v62 = vadd.f32 %v729_v16, %v261_v54  ;;  %v341_v63 = vadd.f32 %v617_v59, %v729_v16  ;;  %v232_v1 = vpop.f32.mrb[7].mxu0  ;;  %v264_v2 = vpop.f32.mrb[7].mxu1 }
 0x102   :  { %v349_v0 = vadd.f32 %v625_v60, %v729_v16  ;;  %535 = vst [vmem:[%s778_s3] sm:$0xff] %v534_v55   ;;  %574 = vst [vmem:[%s778_s3 + $0x20] sm:$0xff] %v554_v56   ;;  %v372_v3 = vmul.f32 0.01, %v340_v57  ;;  %vm356_vm8 = vcmp.ge.f32.partialorder %v340_v57, 0.0  ;;  %v380_v4 = vmul.f32 0.01, %v348_v58 }
 0x103   :  { %vm364_vm9 = vcmp.ge.f32.partialorder %v348_v58, 0.0  ;;  %vm354_vm10 = vcmp.ge.f32.partialorder %v338_v61, 0.0  ;;  %vm357_vm11 = vcmp.ge.f32.partialorder %v341_v63, 0.0  ;;  %v373_v5 = vmul.f32 0.01, %v341_v63 }
 0x104   :  { %v370_v6 = vmul.f32 0.01, %v338_v61  ;;  %vm362_vm12 = vcmp.ge.f32.partialorder %v346_v62, 0.0  ;;  %vm365_vm13 = vcmp.ge.f32.partialorder %v349_v0, 0.0  ;;  %v381_v7 = vmul.f32 0.01, %v349_v0 }
 0x105   :  { %v388_v8 = vsel %vm356_vm8, %v340_v57, %v372_v3  ;;  %v389_v9 = vsel %vm357_vm11, %v341_v63, %v373_v5  ;;  %v339_v10 = vadd.f32 %v729_v16, %v232_v1  ;;  %v347_v11 = vadd.f32 %v729_v16, %v264_v2 }
 0x106   :  { %v396_v12 = vsel %vm364_vm9, %v348_v58, %v380_v4  ;;  %v378_v13 = vmul.f32 0.01, %v346_v62  ;;  %v549_v14 = vpack.c.bf16 %v389_v9, %v388_v8  ;;  %v397_v15 = vsel %vm365_vm13, %v349_v0, %v381_v7 }
 0x107   :  { %v569_v17 = vpack.c.bf16 %v397_v15, %v396_v12  ;;  %vm355_vm14 = vcmp.ge.f32.partialorder %v339_v10, 0.0  ;;  %v371_v18 = vmul.f32 0.01, %v339_v10  ;;  %vm363_vm15 = vcmp.ge.f32.partialorder %v347_v11, 0.0 }
 0x108   :  { %573 = vst [vmem:[%s778_s3 + $0x18] sm:$0xff] %v549_v14   ;;  %v379_v19 = vmul.f32 0.01, %v347_v11  ;;  %v386_v20 = vsel %vm354_vm10, %v338_v61, %v370_v6  ;;  %v394_v21 = vsel %vm362_vm12, %v346_v62, %v378_v13 }
 0x109   :  { %577 = vst [vmem:[%s778_s3 + $0x38] sm:$0xff] %v569_v17   ;;  %v387_v16 = vsel %vm355_vm14, %v339_v10, %v371_v18 }
 0x10a   :  { %v544_v22 = vpack.c.bf16 %v387_v16, %v386_v20  ;;  %v395_v23 = vsel %vm363_vm15, %v347_v11, %v379_v19 }
 0x10b   :  { %v564_v24 = vpack.c.bf16 %v395_v23, %v394_v21 }
 0x10c   :  { %572 = vst [vmem:[%s778_s3 + $0x10] sm:$0xff] %v544_v22  }
 0x10d   :  { %576 = vst [vmem:[%s778_s3 + $0x30] sm:$0xff] %v564_v24  }

// kernel: vae_forward.8
= control target key start
LH: loop header
LB: loop body
LE: loop exit
PB: predicated region body
PF: predicated region fallthrough
CT: control target
= control target key end

     0   :  { %s347_s1 = inlined_call_operand.vmem [shape: bf16[128,128], index: 1, kind: input, shape index: {}]   ;;  %s348_s0 = inlined_call_operand.vmem [shape: bf16[32,128], index: 0, kind: input, shape index: {}]   ;;  %s349_s2 = inlined_call_operand.vmem [shape: f32[1,128], index: 2, kind: input, shape index: {}]   ;;  %s350_s3 = inlined_call_operand.vmem [shape: bf16[32,128], index: 3, kind: output, shape index: {}]  }
   0x1   :  { %v278_v0 = vld [vmem:[%s347_s1] sm:$0xff]   ;;  %v279_v1 = vld [vmem:[%s347_s1 + $0x8] sm:$0xff]   ;;  %v280_v2 = vld [vmem:[%s347_s1 + $0x10] sm:$0xff]  }
   0x2   :  { %258 = vmatprep.subr.bf16.mxu0 %v278_v0  ;;  %v281_v3 = vld [vmem:[%s347_s1 + $0x18] sm:$0xff]   ;;  %v286_v4 = vld [vmem:[%s348_s0] sm:$0xff]   ;;  %v283_v6 = vld [vmem:[%s347_s1 + $0x28] sm:$0xff]  }
   0x3   :  { %259 = vmatpush3.bf16.msra.mxu0 %v278_v0  ;;  %274 = vmatprep.mubr.bf16.mxu0 %v286_v4  ;;  %v282_v5 = vld [vmem:[%s347_s1 + $0x20] sm:$0xff]   ;;  %v284_v7 = vld [vmem:[%s347_s1 + $0x30] sm:$0xff]   ;;  %v285_v8 = vld [vmem:[%s347_s1 + $0x38] sm:$0xff]  }
   0x4   :  { %260 = vmatprep.subr.bf16.mxu0 %v279_v1  ;;  %v287_v9 = vld [vmem:[%s348_s0 + $0x8] sm:$0xff]   ;;  %v228_v10 = vld [vmem:[%s349_s2] ss:$0 sm:$0xff] }
   0x7   :  { %261 = vmatpush3.bf16.msra.mxu0 %v279_v1 }
   0x8   :  { %262 = vmatprep.subr.bf16.mxu0 %v280_v2 }
   0xb   :  { %263 = vmatpush3.bf16.msra.mxu0 %v280_v2 }
   0xc   :  { %264 = vmatprep.subr.bf16.mxu0 %v281_v3 }
   0xf   :  { %265 = vmatpush3.bf16.msra.mxu0 %v281_v3 }
  0x10   :  { %266 = vmatprep.subr.bf16.mxu0 %v282_v5 }
  0x13   :  { %267 = vmatpush3.bf16.msra.mxu0 %v282_v5 }
  0x14   :  { %268 = vmatprep.subr.bf16.mxu0 %v283_v6 }
  0x17   :  { %269 = vmatpush3.bf16.msra.mxu0 %v283_v6 }
  0x18   :  { %270 = vmatprep.subr.bf16.mxu0 %v284_v7 }
  0x1b   :  { %271 = vmatpush3.bf16.msra.mxu0 %v284_v7 }
  0x1c   :  { %272 = vmatprep.subr.bf16.mxu0 %v285_v8 }
  0x1f   :  { %273 = vmatpush3.bf16.msra.mxu0 %v285_v8 }
  0x22   :  { %275 = vmatmul.mubr.bf16.vlgmr.msra.gmra.mrb[0].mxu0 %v287_v9 }
  0xf5   :  { %v276_v11 = vpop.f32.mrb[0].mxu0 }
  0xf6   :  { %v180_v12 = vadd.f32 %v276_v11, %v228_v10  ;;  %v141_v13 = vpop.f32.mrb[1].mxu0 }
  0xf7   :  { %v178_v14 = vadd.f32 %v228_v10, %v141_v13  ;;  %v277_v15 = vpop.f32.mrb[2].mxu0 }
  0xf8   :  { %v188_v16 = vmul.f32 0.01, %v180_v12  ;;  %v181_v17 = vadd.f32 %v277_v15, %v228_v10  ;;  %v144_v18 = vpop.f32.mrb[3].mxu0  ;;  %vm184_vm0 = vcmp.ge.f32.partialorder %v180_v12, 0.0 }
  0xf9   :  { %v186_v19 = vmul.f32 0.01, %v178_v14  ;;  %v179_v20 = vadd.f32 %v228_v10, %v144_v18  ;;  %vm182_vm1 = vcmp.ge.f32.partialorder %v178_v14, 0.0 }
  0xfa   :  { %vm185_vm2 = vcmp.ge.f32.partialorder %v181_v17, 0.0  ;;  %v189_v21 = vmul.f32 0.01, %v181_v17  ;;  %v192_v23 = vsel %vm184_vm0, %v180_v12, %v188_v16 }
  0xfb   :  { %vm183_vm3 = vcmp.ge.f32.partialorder %v179_v20, 0.0  ;;  %v187_v22 = vmul.f32 0.01, %v179_v20  ;;  %v190_v25 = vsel %vm182_vm1, %v178_v14, %v186_v19 }
  0xfc   :  { %v193_v24 = vsel %vm185_vm2, %v181_v17, %v189_v21 }
  0xfd   :  { %v245_v26 = vpack.c.bf16 %v193_v24, %v192_v23  ;;  %v191_v27 = vsel %vm183_vm3, %v179_v20, %v187_v22 }
  0xfe   :  { %v240_v28 = vpack.c.bf16 %v191_v27, %v190_v25 }
  0xff   :  { %247 = vst [vmem:[%s350_s3 + $0x8] sm:$0xff] %v245_v26  }
 0x100   :  { %241 = vst [vmem:[%s350_s3] sm:$0xff] %v240_v28  }

// kernel: vae_forward.9
= control target key start
LH: loop header
LB: loop body
LE: loop exit
PB: predicated region body
PF: predicated region fallthrough
CT: control target
= control target key end

     0   :  { %v280_v35 = vlaneseq  ;;  %s548_s1 = inlined_call_operand.vmem [shape: bf16[256,256], index: 1, kind: input, shape index: {}]   ;;  %s549_s0 = inlined_call_operand.vmem [shape: bf16[8,256], index: 0, kind: input, shape index: {}]   ;;  %s550_s2 = inlined_call_operand.vmem [shape: f32[1,256], index: 2, kind: input, shape index: {}]   ;;  %s551_s4 = inlined_call_operand.vmem [shape: f32[8,128], index: 4, kind: output, shape index: {0}]   ;;  %s552_s5 = inlined_call_operand.vmem [shape: f32[8,128], index: 5, kind: output, shape index: {1}]   ;;  %s553_s3 = inlined_call_operand.vmem [shape: f32[8,128], index: 3, kind: input, shape index: {}]   ;;  %s554_s6 = inlined_call_operand.vmem [shape: f32[8,128], index: 6, kind: output, shape index: {2}]  }
   0x1   :  { %v347_v0 = vld [vmem:[%s548_s1 + $0x4] ss:$8 sps:$4 sm:$0xff]   ;;  %v349_v1 = vld [vmem:[%s548_s1] ss:$8 sps:$4 sm:$0xff]   ;;  %v350_v2 = vld [vmem:[%s548_s1 + $0x14] ss:$8 sps:$4 sm:$0xff]  }
   0x2   :  { %228 = vmatprep.subr.bf16.mxu0 %v347_v0  ;;  %v352_v3 = vld [vmem:[%s548_s1 + $0x10] ss:$8 sps:$4 sm:$0xff]   ;;  %v353_v4 = vld [vmem:[%s548_s1 + $0x24] ss:$8 sps:$4 sm:$0xff]   ;;  %v355_v5 = vld [vmem:[%s548_s1 + $0x20] ss:$8 sps:$4 sm:$0xff]  }
   0x3   :  { %229 = vmatpush1.bf16.msra.mxu0 %v349_v1  ;;  %v356_v6 = vld [vmem:[%s548_s1 + $0x34] ss:$8 sps:$4 sm:$0xff]   ;;  %v358_v7 = vld [vmem:[%s548_s1 + $0x30] ss:$8 sps:$4 sm:$0xff]   ;;  %v359_v8 = vld [vmem:[%s548_s1 + $0x44] ss:$8 sps:$4 sm:$0xff]  }
   0x4   :  { %230 = vmatprep.subr.bf16.mxu0 %v350_v2  ;;  %v361_v9 = vld [vmem:[%s548_s1 + $0x40] ss:$8 sps:$4 sm:$0xff]   ;;  %v362_v10 = vld [vmem:[%s548_s1 + $0x54] ss:$8 sps:$4 sm:$0xff]   ;;  %v364_v11 = vld [vmem:[%s548_s1 + $0x50] ss:$8 sps:$4 sm:$0xff]  }
   0x5   :  { %v365_v12 = vld [vmem:[%s548_s1 + $0x64] ss:$8 sps:$4 sm:$0xff]   ;;  %v367_v15 = vld [vmem:[%s548_s1 + $0x60] ss:$8 sps:$4 sm:$0xff]   ;;  %v368_v16 = vld [vmem:[%s548_s1 + $0x74] ss:$8 sps:$4 sm:$0xff]  }
   0x6   :  { %v28_v13 = vld [vmem:[%s549_s0] sm:$0xff]  ;;  %v370_v17 = vld [vmem:[%s548_s1 + $0x70] ss:$8 sps:$4 sm:$0xff]   ;;  %v374_v20 = vld [vmem:[%s548_s1 + $0x94] ss:$8 sps:$4 sm:$0xff]   ;;  %v281_v36 = vshrl.u32 %v280_v35, 7 }
   0x7   :  { %231 = vmatpush1.bf16.msra.mxu0 %v352_v3  ;;  %v314_v14 = vcombine.high %v28_v13, %v28_v13  ;;  %v371_v18 = vld [vmem:[%s548_s1 + $0x84] ss:$8 sps:$4 sm:$0xff]   ;;  %v373_v19 = vld [vmem:[%s548_s1 + $0x80] ss:$8 sps:$4 sm:$0xff]   ;;  %v376_v21 = vld [vmem:[%s548_s1 + $0x90] ss:$8 sps:$4 sm:$0xff]   ;;  %v313_v34 = vcombine.low %v28_v13, %v28_v13 }
   0x8   :  { %232 = vmatprep.subr.bf16.mxu0 %v353_v4  ;;  %v377_v22 = vld [vmem:[%s548_s1 + $0xa4] ss:$8 sps:$4 sm:$0xff]   ;;  %v379_v23 = vld [vmem:[%s548_s1 + $0xa0] ss:$8 sps:$4 sm:$0xff]   ;;  %v380_v24 = vld [vmem:[%s548_s1 + $0xb4] ss:$8 sps:$4 sm:$0xff]  }
   0x9   :  { %260 = vmatprep.mubr.bf16.mxu0 %v314_v14  ;;  %v382_v25 = vld [vmem:[%s548_s1 + $0xb0] ss:$8 sps:$4 sm:$0xff]   ;;  %v383_v26 = vld [vmem:[%s548_s1 + $0xc4] ss:$8 sps:$4 sm:$0xff]   ;;  %v385_v27 = vld [vmem:[%s548_s1 + $0xc0] ss:$8 sps:$4 sm:$0xff]  }
   0xa   :  { %v386_v28 = vld [vmem:[%s548_s1 + $0xd4] ss:$8 sps:$4 sm:$0xff]   ;;  %v388_v29 = vld [vmem:[%s548_s1 + $0xd0] ss:$8 sps:$4 sm:$0xff]   ;;  %v389_v30 = vld [vmem:[%s548_s1 + $0xe4] ss:$8 sps:$4 sm:$0xff]  }
   0xb   :  { %233 = vmatpush1.bf16.msra.mxu0 %v355_v5  ;;  %v391_v31 = vld [vmem:[%s548_s1 + $0xe0] ss:$8 sps:$4 sm:$0xff]   ;;  %v392_v32 = vld [vmem:[%s548_s1 + $0xf4] ss:$8 sps:$4 sm:$0xff]   ;;  %v394_v33 = vld [vmem:[%s548_s1 + $0xf0] ss:$8 sps:$4 sm:$0xff]  }
   0xc   :  { %234 = vmatprep.subr.bf16.mxu0 %v356_v6  ;;  %v282_v37 = vsub.s32 0, %v281_v36  ;;  %v278_v38 = vld [vmem:[%s550_s2] sm:$0x3]  ;;  %v286_v39 = vsub.s32 1, %v281_v36 }
   0xd   :  { %v294_v50 = vld [vmem:[%s553_s3] sm:$0xff] }
   0xe   :  { %v283_v40 = vrot.slane %v278_v38, %v282_v37  ;;  %v287_v41 = vrot.slane %v278_v38, %v286_v39 }
   0xf   :  { %235 = vmatpush1.bf16.msra.mxu0 %v358_v7 }
  0x10   :  { %236 = vmatprep.subr.bf16.mxu0 %v359_v8 }
  0x13   :  { %237 = vmatpush1.bf16.msra.mxu0 %v361_v9 }
  0x14   :  { %238 = vmatprep.subr.bf16.mxu0 %v362_v10 }
  0x17   :  { %239 = vmatpush1.bf16.msra.mxu0 %v364_v11 }
  0x18   :  { %240 = vmatprep.subr.bf16.mxu0 %v365_v12 }
  0x1b   :  { %241 = vmatpush1.bf16.msra.mxu0 %v367_v15 }
  0x1c   :  { %242 = vmatprep.subr.bf16.mxu0 %v368_v16 }
  0x1f   :  { %243 = vmatpush1.bf16.msra.mxu0 %v370_v17 }
  0x20   :  { %244 = vmatprep.subr.bf16.mxu0 %v371_v18 }
  0x23   :  { %245 = vmatpush1.bf16.msra.mxu0 %v373_v19 }
  0x24   :  { %246 = vmatprep.subr.bf16.mxu0 %v374_v20 }
  0x27   :  { %247 = vmatpush1.bf16.msra.mxu0 %v376_v21 }
  0x28   :  { %248 = vmatprep.subr.bf16.mxu0 %v377_v22 }
  0x2b   :  { %249 = vmatpush1.bf16.msra.mxu0 %v379_v23 }
  0x2c   :  { %250 = vmatprep.subr.bf16.mxu0 %v380_v24 }
  0x2f   :  { %251 = vmatpush1.bf16.msra.mxu0 %v382_v25 }
  0x30   :  { %252 = vmatprep.subr.bf16.mxu0 %v383_v26 }
  0x33   :  { %253 = vmatpush1.bf16.msra.mxu0 %v385_v27 }
  0x34   :  { %254 = vmatprep.subr.bf16.mxu0 %v386_v28 }
  0x37   :  { %255 = vmatpush1.bf16.msra.mxu0 %v388_v29 }
  0x38   :  { %256 = vmatprep.subr.bf16.mxu0 %v389_v30 }
  0x3b   :  { %257 = vmatpush1.bf16.msra.mxu0 %v391_v31 }
  0x3c   :  { %258 = vmatprep.subr.bf16.mxu0 %v392_v32 }
  0x3f   :  { %259 = vmatpush1.bf16.msra.mxu0 %v394_v33 }
  0x42   :  { %261 = vmatmul.mubr.bf16.vlgmr.msra.gmra.mrb[0].mxu0 %v313_v34 }
 0x115   :  { %v262_v42 = vpop.f32.mrb[0].mxu0 }
 0x116   :  { %v290_v43 = vadd.f32 %v283_v40, %v262_v42  ;;  %v264_v44 = vpop.f32.mrb[1].mxu0 }
 0x117   :  { %v291_v45 = vadd.f32 %v287_v41, %v264_v44  ;;  %v266_v46 = vpop.f32.mrb[2].mxu0 }
 0x118   :  { %292 = vst [vmem:[%s551_s4] sm:$0xff] %v290_v43  ;;  %v267_v47 = vpop.f32.mrb[3].mxu0 }
 0x119   :  { %293 = vst [vmem:[%s552_s5] sm:$0xff] %v291_v45  ;;  %v295_v48 = vmul.f32 0.5, %v291_v45 }
 0x11b   :  { %v296_v49 = vmul.f32 1.442695, %v295_v48 }
 0x11d   :  { %397 = vpow2.f32 %v296_v49 }
 0x127   :  { %v398_v51 = vpop.eup %397 }
 0x128   :  { %v298_v52 = vmul.f32 %v398_v51, %v294_v50 }
 0x12a   :  { %v299_v53 = vadd.f32 %v298_v52, %v290_v43 }
 0x12c   :  { %300 = vst [vmem:[%s554_s6] sm:$0xff] %v299_v53 }

// kernel: vae_forward.10
= control target key start
LH: loop header
LB: loop body
LE: loop exit
PB: predicated region body
PF: predicated region fallthrough
CT: control target
= control target key end

     0   :  { %v240_v1 = vmov 0   ;;  %v172_v18 = vlaneseq  ;;  %s318_s1 = inlined_call_operand.vmem [shape: bf16[128,256], index: 1, kind: input, shape index: {}]   ;;  %s319_s0 = inlined_call_operand.vmem [shape: bf16[8,128], index: 0, kind: input, shape index: {}]   ;;  %s320_s2 = inlined_call_operand.vmem [shape: f32[1,256], index: 2, kind: input, shape index: {}]   ;;  %s321_s3 = inlined_call_operand.vmem [shape: bf16[8,256], index: 3, kind: output, shape index: {}]  }
   0x1   :  { %v216_v0 = vld [vmem:[%s318_s1 + $0x4] ss:$8 sps:$4 sm:$0xff]   ;;  %152 = vmatprep.mubr.bf16.mxu0 %v240_v1  ;;  %v218_v2 = vld [vmem:[%s318_s1] ss:$8 sps:$4 sm:$0xff]   ;;  %v219_v3 = vld [vmem:[%s318_s1 + $0x14] ss:$8 sps:$4 sm:$0xff]  }
   0x2   :  { %120 = vmatprep.subr.bf16.mxu0 %v216_v0  ;;  %v221_v4 = vld [vmem:[%s318_s1 + $0x10] ss:$8 sps:$4 sm:$0xff]   ;;  %v222_v5 = vld [vmem:[%s318_s1 + $0x24] ss:$8 sps:$4 sm:$0xff]   ;;  %v224_v6 = vld [vmem:[%s318_s1 + $0x20] ss:$8 sps:$4 sm:$0xff]  }
   0x3   :  { %121 = vmatpush1.bf16.msra.mxu0 %v218_v2  ;;  %v225_v7 = vld [vmem:[%s318_s1 + $0x34] ss:$8 sps:$4 sm:$0xff]   ;;  %v227_v8 = vld [vmem:[%s318_s1 + $0x30] ss:$8 sps:$4 sm:$0xff]   ;;  %v228_v9 = vld [vmem:[%s318_s1 + $0x44] ss:$8 sps:$4 sm:$0xff]  }
   0x4   :  { %122 = vmatprep.subr.bf16.mxu0 %v219_v3  ;;  %v230_v10 = vld [vmem:[%s318_s1 + $0x40] ss:$8 sps:$4 sm:$0xff]   ;;  %v231_v11 = vld [vmem:[%s318_s1 + $0x54] ss:$8 sps:$4 sm:$0xff]   ;;  %v233_v12 = vld [vmem:[%s318_s1 + $0x50] ss:$8 sps:$4 sm:$0xff]  }
   0x5   :  { %v234_v13 = vld [vmem:[%s318_s1 + $0x64] ss:$8 sps:$4 sm:$0xff]   ;;  %v236_v14 = vld [vmem:[%s318_s1 + $0x60] ss:$8 sps:$4 sm:$0xff]   ;;  %v237_v15 = vld [vmem:[%s318_s1 + $0x74] ss:$8 sps:$4 sm:$0xff]  }
   0x6   :  { %v239_v16 = vld [vmem:[%s318_s1 + $0x70] ss:$8 sps:$4 sm:$0xff]   ;;  %v23_v17 = vld [vmem:[%s319_s0] sm:$0xf]  ;;  %v173_v19 = vshrl.u32 %v172_v18, 7 }
   0x7   :  { %123 = vmatpush1.bf16.msra.mxu0 %v221_v4  ;;  %v170_v21 = vld [vmem:[%s320_s2] sm:$0x3] }
   0x8   :  { %124 = vmatprep.subr.bf16.mxu0 %v222_v5  ;;  %v174_v20 = vsub.s32 0, %v173_v19  ;;  %v178_v22 = vsub.s32 1, %v173_v19 }
   0xa   :  { %v175_v23 = vrot.slane %v170_v21, %v174_v20  ;;  %v179_v24 = vrot.slane %v170_v21, %v178_v22 }
   0xb   :  { %125 = vmatpush1.bf16.msra.mxu0 %v224_v6 }
   0xc   :  { %126 = vmatprep.subr.bf16.mxu0 %v225_v7 }
   0xf   :  { %127 = vmatpush1.bf16.msra.mxu0 %v227_v8 }
  0x10   :  { %128 = vmatprep.subr.bf16.mxu0 %v228_v9 }
  0x13   :  { %129 = vmatpush1.bf16.msra.mxu0 %v230_v10 }
  0x14   :  { %130 = vmatprep.subr.bf16.mxu0 %v231_v11 }
  0x17   :  { %131 = vmatpush1.bf16.msra.mxu0 %v233_v12 }
  0x18   :  { %132 = vmatprep.subr.bf16.mxu0 %v234_v13 }
  0x1b   :  { %133 = vmatpush1.bf16.msra.mxu0 %v236_v14 }
  0x1c   :  { %134 = vmatprep.subr.bf16.mxu0 %v237_v15 }
  0x1f   :  { %135 = vmatpush1.bf16.msra.mxu0 %v239_v16 }
  0x22   :  { %153 = vmatmul.mubr.bf16.vlgmr.msra.gmra.mrb[0].mxu0 %v23_v17 }
  0xf5   :  { %v154_v25 = vpop.f32.mrb[0].mxu0 }
  0xf6   :  { %v182_v26 = vadd.f32 %v175_v23, %v154_v25  ;;  %v156_v27 = vpop.f32.mrb[1].mxu0 }
  0xf7   :  { %v183_v28 = vadd.f32 %v179_v24, %v156_v27  ;;  %v158_v29 = vpop.f32.mrb[2].mxu0 }
  0xf8   :  { %v159_v30 = vpop.f32.mrb[3].mxu0 }
  0xf9   :  { %v214_v31 = vpack.c.bf16 %v183_v28, %v182_v26 }
  0xfb   :  { %192 = vst [vmem:[%s321_s3] sm:$0xff] %v214_v31 }

// kernel: tile.13
= control target key start
LH: loop header
LB: loop body
LE: loop exit
PB: predicated region body
PF: predicated region fallthrough
CT: control target
= control target key end

     0   :  { %s22_s0 = inlined_call_operand.vmem [shape: f32[8], index: 0, kind: input, shape index: {}]   ;;  %s23_s1 = inlined_call_operand.vmem [shape: f32[4,8], index: 1, kind: output, shape index: {}]  }
   0x1   :  { %v4_v0 = vld [vmem:[%s22_s0] ss:$0 sm:$0xff] }
   0x2   :  { %5 = vst [vmem:[%s23_s1] sm:$0xf] %v4_v0 }

// kernel: tile.14
= control target key start
LH: loop header
LB: loop body
LE: loop exit
PB: predicated region body
PF: predicated region fallthrough
CT: control target
= control target key end

     0   :  { %vm7_vm0 = vcmask 64512   ;;  %s37_s8 = smov 8   ;;  %s38_s9 = smov 16   ;;  %vm13_vm1 = vcmask 261312   ;;  %vm19_vm2 = vcmask 195712   ;;  %vm25_vm3 = vcmask 130112   ;;  %s55_s0 = inlined_call_operand.vmem [shape: f32[4,8], index: 0, kind: input, shape index: {}]   ;;  %s56_s1 = inlined_call_operand.vmem [shape: f32[1,32], index: 1, kind: output, shape index: {}]  }
   0x1   :  { %v4_v0 = vld [vmem:[%s55_s0] sm:$0xf]  ;;  %s36_s0 = smov 24  }
   0x2   :  { %5 = vst [vmem:[#allocation1] sm:$0xf] %v4_v0 }
   0x9   :  { %v10_v1 = vld [vmem:[#allocation1 + $0x3] sm:$0x1]   ;;  %v22_v2 = vld [vmem:[#allocation1 + $0x1] sm:$0x1]   ;;  %v6_v3 = vld [vmem:[#allocation1] sm:$0x1]  }
   0xa   :  { %11 = vrot.lane.b32.xlu0 %v10_v1, %s36_s0  ;;  %23 = vrot.lane.b32.xlu1 %v22_v2, %s37_s8  ;;  %v16_v4 = vld [vmem:[#allocation1 + $0x2] sm:$0x1]   ;;  %8 = vst.msk [vmem:[#allocation0] sm:$0x1] %vm7_vm0, %v6_v3  }
   0xe   :  { %17 = vrot.lane.b32.xlu0 %v16_v4, %s38_s9 }
  0x7c   :  { %v12_v5 = vpop.permute.xlu0 %11   ;;  %v24_v6 = vpop.permute.xlu1 %23  }
  0x7d   :  { %14 = vst.msk [vmem:[#allocation0] sm:$0x1] %vm13_vm1, %v12_v5  }
  0x80   :  { %v18_v7 = vpop.permute.xlu0 %17  }
  0x81   :  { %20 = vst.msk [vmem:[#allocation0] sm:$0x1] %vm19_vm2, %v18_v7  }
  0x82   :  { %26 = vst.msk [vmem:[#allocation0] sm:$0x1] %vm25_vm3, %v24_v6  }
  0x89   :  { %v30_v8 = vld [vmem:[#allocation0] sm:$0x1] }
  0x8a   :  { %32 = vst [vmem:[%s56_s1] sm:$0x1] %v30_v8 }

// kernel: vae_forward.13
= control target key start
LH: loop header
LB: loop body
LE: loop exit
PB: predicated region body
PF: predicated region fallthrough
CT: control target
= control target key end

     0   :  { %s1532_s12 = smov 0   ;;  %s1534_s13 = smov 0   ;;  %s1709_s0 = inlined_call_operand.vmem [shape: bf16[512,128], index: 0, kind: input, shape index: {}]   ;;  %s1710_s1 = inlined_call_operand.vmem [shape: bf16[128,128], index: 1, kind: input, shape index: {}]   ;;  %s1711_s2 = inlined_call_operand.vmem [shape: f32[1,128], index: 2, kind: input, shape index: {}]   ;;  %s1712_s3 = inlined_call_operand.vmem [shape: f32[512,128], index: 3, kind: output, shape index: {}]  }
   0x1   :  { %s1536_s14 = smov 0  }
   0x2 LB: > { %s32_s15 = sadd.s32 1, %s1506_s13  ;;  %p1160_p0 = scmp.ge.s32.totalorder %s1510_s14, 1  ;;  %s1510_s14 = sphi %s1536_s14, %s13_s14   ;;  %s1506_s13 = sphi %s1534_s13, %s1714_s13   ;;  %s1502_s12 = sphi %s1532_s12, %s1713_s12  }
   0x3   : > { %p34_p1 = scmp.ge.s32.totalorder %s32_s15, 2  ;;  %p188_p2 = scmp.lt.s32.totalorder %s1510_s14, 3 }
   0x5   : > { %s1716_s15 = smov (%p34_p1, %s32_s15), 0  ;;  %p189_p3 = pnand %p1160_p0, %p188_p2 }
   0x6   : > { %v1336_v0 = vld [vmem:[%s1710_s1] sm:$0xff] (!%p189_p3)   ;;  %s1161_s18 = sshll.u32 (!%p189_p3), %s1502_s12, 5  ;;  %v1337_v1 = vld [vmem:[%s1710_s1 + $0x8] sm:$0xff] (!%p189_p3)   ;;  %v1338_v2 = vld [vmem:[%s1710_s1 + $0x10] sm:$0xff] (!%p189_p3)  }
   0x7   : > { %192 = sbr.rel (%p189_p3) target bundleno = 339 (0x153), region = 32  ;;  %p230_p4 = scmp.lt.s32.totalorder (!%p189_p3), %s1161_s18, 63  ;;  %1248 = vmatprep.subr.bf16.mxu0 (!%p189_p3), %v1336_v0  ;;  %1296 = vmatprep.subr.bf16.mxu1 (!%p189_p3), %v1336_v0  ;;  %v1339_v3 = vld [vmem:[%s1710_s1 + $0x18] sm:$0xff] (!%p189_p3)   ;;  %v1340_v6 = vld [vmem:[%s1710_s1 + $0x20] sm:$0xff] (!%p189_p3)   ;;  %v1341_v7 = vld [vmem:[%s1710_s1 + $0x28] sm:$0xff] (!%p189_p3)  }
   0x8   : > { %1249 = vmatpush3.bf16.msra.mxu0 (!%p189_p3), %v1336_v0  ;;  %1304 = vmatpush3.bf16.msra.mxu1 (!%p189_p3), %v1336_v0  ;;  %v1342_v8 = vld [vmem:[%s1710_s1 + $0x30] sm:$0xff] (!%p189_p3)   ;;  %v1343_v9 = vld [vmem:[%s1710_s1 + $0x38] sm:$0xff] (!%p189_p3)   ;;  %v1601_v24 = vld [vmem:[%s1711_s2] ss:$0 sm:$0xff] (!%p189_p3) }
   0x9   : > { %1250 = vmatprep.subr.bf16.mxu0 (!%p189_p3), %v1337_v1  ;;  %1297 = vmatprep.subr.bf16.mxu1 (!%p189_p3), %v1337_v1 }
   0xc   : > { %1251 = vmatpush3.bf16.msra.mxu0 (!%p189_p3), %v1337_v1  ;;  %1305 = vmatpush3.bf16.msra.mxu1 (!%p189_p3), %v1337_v1 }
   0xd   : > { %1252 = vmatprep.subr.bf16.mxu0 (!%p189_p3), %v1338_v2  ;;  %1298 = vmatprep.subr.bf16.mxu1 (!%p189_p3), %v1338_v2 }
   0xe   : > { %s1718_s18 = smov (!%p230_p4, %s1161_s18), 63 }
   0xf   : > { %s1162_s23 = sshll.u32 %s1718_s18, 2  ;;  %s1164_s12 = sshll.u32 %s1718_s18, 3 }
  0x10   : > { %s1565_s26 = scalar_lea.vmem %s1709_s0, %s1162_s23  ;;  %1253 = vmatpush3.bf16.msra.mxu0 %v1338_v2  ;;  %1306 = vmatpush3.bf16.msra.mxu1 %v1338_v2  ;;  %s1631_s18 = scalar_lea.vmem %s1712_s3, %s1164_s12 }
  0x11   : > { %v1344_v4 = vld [vmem:[%s1565_s26] sm:$0xff]   ;;  %1254 = vmatprep.subr.bf16.mxu0 %v1339_v3  ;;  %1299 = vmatprep.subr.bf16.mxu1 %v1339_v3  ;;  %v1346_v10 = vld [vmem:[%s1565_s26 + $0x8] sm:$0xff]   ;;  %v1348_v12 = vld [vmem:[%s1565_s26 + $0x10] sm:$0xff]  }
  0x12   : > { %v1345_v5 = vld [vmem:[%s1565_s26 + $0x40] sm:$0xff]   ;;  %1264 = vmatprep.mubr.bf16.mxu0 %v1344_v4  ;;  %v1347_v11 = vld [vmem:[%s1565_s26 + $0x48] sm:$0xff]   ;;  %v1349_v13 = vld [vmem:[%s1565_s26 + $0x50] sm:$0xff]  }
  0x13   : > { %1280 = vmatprep.mubr.bf16.mxu1 %v1345_v5  ;;  %v1350_v14 = vld [vmem:[%s1565_s26 + $0x18] sm:$0xff]   ;;  %v1352_v16 = vld [vmem:[%s1565_s26 + $0x20] sm:$0xff]   ;;  %v1354_v18 = vld [vmem:[%s1565_s26 + $0x28] sm:$0xff]  }
  0x14   : > { %1255 = vmatpush3.bf16.msra.mxu0 %v1339_v3  ;;  %1307 = vmatpush3.bf16.msra.mxu1 %v1339_v3  ;;  %v1351_v15 = vld [vmem:[%s1565_s26 + $0x58] sm:$0xff]   ;;  %v1353_v17 = vld [vmem:[%s1565_s26 + $0x60] sm:$0xff]   ;;  %v1355_v19 = vld [vmem:[%s1565_s26 + $0x68] sm:$0xff]  }
  0x15   : > { %1256 = vmatprep.subr.bf16.mxu0 %v1340_v6  ;;  %1300 = vmatprep.subr.bf16.mxu1 %v1340_v6  ;;  %v1356_v20 = vld [vmem:[%s1565_s26 + $0x30] sm:$0xff]   ;;  %v1358_v22 = vld [vmem:[%s1565_s26 + $0x38] sm:$0xff]  }
  0x16   : > { %v1357_v21 = vld [vmem:[%s1565_s26 + $0x70] sm:$0xff]   ;;  %v1359_v23 = vld [vmem:[%s1565_s26 + $0x78] sm:$0xff]  }
  0x18   : > { %1257 = vmatpush3.bf16.msra.mxu0 %v1340_v6  ;;  %1308 = vmatpush3.bf16.msra.mxu1 %v1340_v6 }
  0x19   : > { %1258 = vmatprep.subr.bf16.mxu0 %v1341_v7  ;;  %1301 = vmatprep.subr.bf16.mxu1 %v1341_v7 }
  0x1c   : > { %1259 = vmatpush3.bf16.msra.mxu0 %v1341_v7  ;;  %1309 = vmatpush3.bf16.msra.mxu1 %v1341_v7 }
  0x1d   : > { %1260 = vmatprep.subr.bf16.mxu0 %v1342_v8  ;;  %1302 = vmatprep.subr.bf16.mxu1 %v1342_v8 }
  0x20   : > { %1261 = vmatpush3.bf16.msra.mxu0 %v1342_v8  ;;  %1310 = vmatpush3.bf16.msra.mxu1 %v1342_v8 }
  0x21   : > { %1262 = vmatprep.subr.bf16.mxu0 %v1343_v9  ;;  %1303 = vmatprep.subr.bf16.mxu1 %v1343_v9 }
  0x24   : > { %1263 = vmatpush3.bf16.msra.mxu0 %v1343_v9  ;;  %1311 = vmatpush3.bf16.msra.mxu1 %v1343_v9 }
  0x27   : > { %1265 = vmatmul.mubr.bf16.vlgmr.msra.gmra.mrb[0].mxu0 %v1346_v10  ;;  %1281 = vmatmul.mubr.bf16.vlgmr.msra.gmra.mrb[0].mxu1 %v1347_v11 }
  0x28   : > { %1268 = vmatprep.mubr.bf16.mxu0 %v1348_v12  ;;  %1284 = vmatprep.mubr.bf16.mxu1 %v1349_v13 }
  0x2f   : > { %1269 = vmatmul.mubr.bf16.gmra.mrb[4].mxu0 %v1350_v14  ;;  %1285 = vmatmul.mubr.bf16.gmra.mrb[4].mxu1 %v1351_v15 }
  0x30   : > { %1272 = vmatprep.mubr.bf16.mxu0 %v1352_v16  ;;  %1288 = vmatprep.mubr.bf16.mxu1 %v1353_v17 }
  0x37   : > { %1273 = vmatmul.mubr.bf16.gmra.mrb[8].mxu0 %v1354_v18  ;;  %1289 = vmatmul.mubr.bf16.gmra.mrb[8].mxu1 %v1355_v19 }
  0x38   : > { %1276 = vmatprep.mubr.bf16.mxu0 %v1356_v20  ;;  %1292 = vmatprep.mubr.bf16.mxu1 %v1357_v21 }
  0x3f   : > { %1277 = vmatmul.mubr.bf16.gmra.mrb[12].mxu0 %v1358_v22  ;;  %1293 = vmatmul.mubr.bf16.gmra.mrb[12].mxu1 %v1359_v23 }
  0xfa   : > { %v1266_v25 = vpop.f32.mrb[0].mxu0  ;;  %v1282_v26 = vpop.f32.mrb[0].mxu1 }
  0xfb   : > { %v789_v27 = vadd.f32 %v1266_v25, %v1601_v24  ;;  %v805_v28 = vadd.f32 %v1282_v26, %v1601_v24  ;;  %v554_v29 = vpop.f32.mrb[1].mxu0  ;;  %v618_v30 = vpop.f32.mrb[1].mxu1 }
  0xfc   : > { %v787_v31 = vadd.f32 %v1601_v24, %v554_v29  ;;  %v803_v32 = vadd.f32 %v1601_v24, %v618_v30  ;;  %v1267_v33 = vpop.f32.mrb[2].mxu0  ;;  %v1283_v34 = vpop.f32.mrb[2].mxu1 }
  0xfd   : > { %v1192_v35 = vmul.f32 -1.442695, %v789_v27  ;;  %v1208_v36 = vmul.f32 -1.442695, %v805_v28  ;;  %v790_v37 = vadd.f32 %v1267_v33, %v1601_v24  ;;  %v806_v38 = vadd.f32 %v1283_v34, %v1601_v24  ;;  %v557_v39 = vpop.f32.mrb[3].mxu0  ;;  %v621_v40 = vpop.f32.mrb[3].mxu1 }
  0xfe   : > { %v1190_v41 = vmul.f32 -1.442695, %v787_v31  ;;  %v1206_v42 = vmul.f32 -1.442695, %v803_v32  ;;  %v788_v43 = vadd.f32 %v1601_v24, %v557_v39  ;;  %v804_v44 = vadd.f32 %v1601_v24, %v621_v40 }
  0xff   : > { %1360 = vpow2.f32 %v1192_v35  ;;  %v1193_v45 = vmul.f32 -1.442695, %v790_v37  ;;  %v1209_v46 = vmul.f32 -1.442695, %v806_v38 }
 0x100   : > { %1362 = vpow2.f32 %v1208_v36  ;;  %v1191_v47 = vmul.f32 -1.442695, %v788_v43  ;;  %v1207_v48 = vmul.f32 -1.442695, %v804_v44 }
 0x101   : > { %1364 = vpow2.f32 %v1190_v41 }
 0x102   : > { %1366 = vpow2.f32 %v1206_v42  ;;  %v1270_v49 = vpop.f32.mrb[4].mxu0  ;;  %v1286_v50 = vpop.f32.mrb[4].mxu1 }
 0x103   : > { %1368 = vpow2.f32 %v1193_v45  ;;  %v793_v51 = vadd.f32 %v1270_v49, %v1601_v24  ;;  %v809_v52 = vadd.f32 %v1286_v50, %v1601_v24  ;;  %v570_v53 = vpop.f32.mrb[5].mxu0  ;;  %v634_v54 = vpop.f32.mrb[5].mxu1 }
 0x104   : > { %1370 = vpow2.f32 %v1209_v46  ;;  %v791_v55 = vadd.f32 %v1601_v24, %v570_v53  ;;  %v807_v56 = vadd.f32 %v1601_v24, %v634_v54  ;;  %v1271_v57 = vpop.f32.mrb[6].mxu0  ;;  %v1287_v58 = vpop.f32.mrb[6].mxu1 }
 0x105   : > { %1372 = vpow2.f32 %v1191_v47  ;;  %v1196_v59 = vmul.f32 -1.442695, %v793_v51  ;;  %v1212_v60 = vmul.f32 -1.442695, %v809_v52  ;;  %v794_v61 = vadd.f32 %v1271_v57, %v1601_v24  ;;  %v573_v62 = vpop.f32.mrb[7].mxu0  ;;  %v637_v63 = vpop.f32.mrb[7].mxu1 }
 0x106   : > { %1374 = vpow2.f32 %v1207_v48  ;;  %v1194_v0 = vmul.f32 -1.442695, %v791_v55  ;;  %v1210_v1 = vmul.f32 -1.442695, %v807_v56  ;;  %v810_v29 = vadd.f32 %v1287_v58, %v1601_v24 }
 0x107   : > { %1376 = vpow2.f32 %v1196_v59  ;;  %v1197_v2 = vmul.f32 -1.442695, %v794_v61  ;;  %v792_v32 = vadd.f32 %v1601_v24, %v573_v62  ;;  %v808_v36 = vadd.f32 %v1601_v24, %v637_v63 }
 0x108   : > { %1378 = vpow2.f32 %v1212_v60  ;;  %v1213_v46 = vmul.f32 -1.442695, %v810_v29 }
 0x109   : > { %v1361_v3 = vpop.eup %1360  ;;  %1380 = vpow2.f32 %v1194_v0  ;;  %v1195_v52 = vmul.f32 -1.442695, %v792_v32  ;;  %v1211_v56 = vmul.f32 -1.442695, %v808_v36 }
 0x10a   : > { %v1363_v4 = vpop.eup %1362  ;;  %v917_v5 = vadd.f32 1.0, %v1361_v3  ;;  %1382 = vpow2.f32 %v1210_v1  ;;  %v1274_v6 = vpop.f32.mrb[8].mxu0 }
 0x10b   : > { %v1290_v7 = vpop.f32.mrb[8].mxu1  ;;  %v1365_v8 = vpop.eup %1364  ;;  %v933_v9 = vadd.f32 1.0, %v1363_v4  ;;  %1384 = vpow2.f32 %v1197_v2  ;;  %v797_v41 = vadd.f32 %v1274_v6, %v1601_v24 }
 0x10c   : > { %v586_v10 = vpop.f32.mrb[9].mxu0  ;;  %v650_v11 = vpop.f32.mrb[9].mxu1  ;;  %1386 = vrcp.f32 %v917_v5  ;;  %v915_v13 = vadd.f32 1.0, %v1365_v8  ;;  %v813_v47 = vadd.f32 %v1290_v7, %v1601_v24 }
 0x10d   : > { %v1367_v12 = vpop.eup %1366  ;;  %v1275_v14 = vpop.f32.mrb[10].mxu0  ;;  %1388 = vrcp.f32 %v933_v9  ;;  %v795_v53 = vadd.f32 %v1601_v24, %v586_v10  ;;  %v811_v57 = vadd.f32 %v1601_v24, %v650_v11  ;;  %v1200_v59 = vmul.f32 -1.442695, %v797_v41 }
 0x10e   : > { %v1616_v15 = vpop.f32.mrb[10].mxu1  ;;  %v1369_v16 = vpop.eup %1368  ;;  %v931_v17 = vadd.f32 1.0, %v1367_v12  ;;  %1390 = vrcp.f32 %v915_v13  ;;  %v798_v60 = vadd.f32 %v1275_v14, %v1601_v24  ;;  %v1216_v62 = vmul.f32 -1.442695, %v813_v47 }
 0x10f   : > { %v1618_v18 = vpop.f32.mrb[11].mxu0  ;;  %v1371_v19 = vpop.eup %1370  ;;  %v918_v20 = vadd.f32 1.0, %v1369_v16  ;;  %v814_v63 = vadd.f32 %v1616_v15, %v1601_v24  ;;  %v1198_v1 = vmul.f32 -1.442695, %v795_v53  ;;  %v1214_v4 = vmul.f32 -1.442695, %v811_v57 }
 0x110   : > { %v1620_v21 = vpop.f32.mrb[11].mxu1  ;;  %v1373_v22 = vpop.eup %1372  ;;  %1392 = vrcp.f32 %v931_v17  ;;  %v934_v23 = vadd.f32 1.0, %v1371_v19  ;;  %v796_v2 = vadd.f32 %v1601_v24, %v1618_v18  ;;  %v1201_v7 = vmul.f32 -1.442695, %v798_v60 }
 0x111   : > { %v1375_v25 = vpop.eup %1374  ;;  %1394 = vrcp.f32 %v918_v20  ;;  %v916_v26 = vadd.f32 1.0, %v1373_v22  ;;  %v812_v5 = vadd.f32 %v1601_v24, %v1620_v21  ;;  %v1217_v10 = vmul.f32 -1.442695, %v814_v63 }
 0x112   : > { %v1377_v27 = vpop.eup %1376  ;;  %1396 = vrcp.f32 %v934_v23  ;;  %v932_v28 = vadd.f32 1.0, %v1375_v25  ;;  %v1278_v33 = vpop.f32.mrb[12].mxu0  ;;  %v1199_v13 = vmul.f32 -1.442695, %v796_v2 }
 0x113   : > { %v1379_v30 = vpop.eup %1378  ;;  %1398 = vrcp.f32 %v916_v26  ;;  %v921_v31 = vadd.f32 1.0, %v1377_v27  ;;  %v1294_v37 = vpop.f32.mrb[12].mxu1  ;;  %v801_v8 = vadd.f32 %v1278_v33, %v1601_v24  ;;  %v1215_v15 = vmul.f32 -1.442695, %v812_v5 }
 0x114   : > { %v1381_v34 = vpop.eup %1380  ;;  %1400 = vrcp.f32 %v932_v28  ;;  %v937_v35 = vadd.f32 1.0, %v1379_v30  ;;  %v1626_v38 = vpop.f32.mrb[13].mxu0  ;;  %v817_v11 = vadd.f32 %v1294_v37, %v1601_v24 }
 0x115   : > { %v1383_v39 = vpop.eup %1382  ;;  %1402 = vrcp.f32 %v921_v31  ;;  %v919_v40 = vadd.f32 1.0, %v1381_v34  ;;  %v1634_v42 = vpop.f32.mrb[13].mxu1  ;;  %v1204_v17 = vmul.f32 -1.442695, %v801_v8 }
 0x116   : > { %v1636_v43 = vpop.f32.mrb[14].mxu0  ;;  %v1385_v44 = vpop.eup %1384  ;;  %1404 = vrcp.f32 %v937_v35  ;;  %v935_v45 = vadd.f32 1.0, %v1383_v39  ;;  %v1220_v19 = vmul.f32 -1.442695, %v817_v11 }
 0x117   : > { %v1639_v48 = vpop.f32.mrb[14].mxu1  ;;  %v1641_v49 = vpop.f32.mrb[15].mxu0  ;;  %1406 = vrcp.f32 %v919_v40  ;;  %v922_v51 = vadd.f32 1.0, %v1385_v44  ;;  %v799_v40 = vadd.f32 %v1601_v24, %v1626_v38 }
 0x118   : > { %v1387_v50 = vpop.eup %1386  ;;  %v1644_v54 = vpop.f32.mrb[15].mxu1  ;;  %1408 = vrcp.f32 %v935_v45  ;;  %v815_v45 = vadd.f32 %v1601_v24, %v1634_v42  ;;  %v818_v53 = vadd.f32 %v1639_v48, %v1601_v24  ;;  %v800_v42 = vadd.f32 %v1601_v24, %v1641_v49 }
 0x119   : > { %v1389_v55 = vpop.eup %1388  ;;  %1013 = vst [vmem:[%s1631_s18 + $0x10] sm:$0xff] %v1387_v50  ;;  %1410 = vrcp.f32 %v922_v51  ;;  %v802_v50 = vadd.f32 %v1636_v43, %v1601_v24 }
 0x11a   : > { %v1391_v58 = vpop.eup %1390  ;;  %1029 = vst [vmem:[%s1631_s18 + $0x90] sm:$0xff] %v1389_v55  ;;  %1412 = vpow2.f32 %v1213_v46  ;;  %v1218_v43 = vmul.f32 -1.442695, %v815_v45  ;;  %v1203_v63 = vmul.f32 -1.442695, %v800_v42 }
 0x11b   : > { %v1393_v61 = vpop.eup %1392  ;;  %1011 = vst [vmem:[%s1631_s18] sm:$0xff] %v1391_v58  ;;  %1414 = vpow2.f32 %v1195_v52  ;;  %v1205_v48 = vmul.f32 -1.442695, %v802_v50 }
 0x11c   : > { %v1395_v0 = vpop.eup %1394  ;;  %1027 = vst [vmem:[%s1631_s18 + $0x80] sm:$0xff] %v1393_v61  ;;  %1416 = vpow2.f32 %v1211_v56  ;;  %v1202_v56 = vmul.f32 -1.442695, %v799_v40 }
 0x11d   : > { %v1397_v3 = vpop.eup %1396  ;;  %1014 = vst [vmem:[%s1631_s18 + $0x18] sm:$0xff] %v1395_v0  ;;  %1418 = vpow2.f32 %v1200_v59  ;;  %v816_v59 = vadd.f32 %v1601_v24, %v1644_v54 }
 0x11e   : > { %v1399_v6 = vpop.eup %1398  ;;  %1030 = vst [vmem:[%s1631_s18 + $0x98] sm:$0xff] %v1397_v3  ;;  %1420 = vpow2.f32 %v1216_v62  ;;  %v1221_v62 = vmul.f32 -1.442695, %v818_v53 }
 0x11f   : > { %v1401_v9 = vpop.eup %1400  ;;  %1012 = vst [vmem:[%s1631_s18 + $0x8] sm:$0xff] %v1399_v6  ;;  %1422 = vpow2.f32 %v1198_v1  ;;  %v1219_v24 = vmul.f32 -1.442695, %v816_v59 }
 0x120   : > { %v1403_v12 = vpop.eup %1402  ;;  %1028 = vst [vmem:[%s1631_s18 + $0x88] sm:$0xff] %v1401_v9  ;;  %1424 = vpow2.f32 %v1214_v4 }
 0x121   : > { %v1405_v14 = vpop.eup %1404  ;;  %1017 = vst [vmem:[%s1631_s18 + $0x30] sm:$0xff] %v1403_v12  ;;  %1426 = vpow2.f32 %v1201_v7 }
 0x122   : > { %v1407_v16 = vpop.eup %1406  ;;  %1033 = vst [vmem:[%s1631_s18 + $0xb0] sm:$0xff] %v1405_v14  ;;  %1428 = vpow2.f32 %v1217_v10 }
 0x123   : > { %v1409_v18 = vpop.eup %1408  ;;  %1015 = vst [vmem:[%s1631_s18 + $0x20] sm:$0xff] %v1407_v16  ;;  %1430 = vpow2.f32 %v1199_v13 }
 0x124   : > { %v1411_v20 = vpop.eup %1410  ;;  %1031 = vst [vmem:[%s1631_s18 + $0xa0] sm:$0xff] %v1409_v18  ;;  %1432 = vpow2.f32 %v1215_v15 }
 0x125   : > { %v1413_v21 = vpop.eup %1412  ;;  %1018 = vst [vmem:[%s1631_s18 + $0x38] sm:$0xff] %v1411_v20  ;;  %1434 = vpow2.f32 %v1204_v17 }
 0x126   : > { %v1415_v22 = vpop.eup %1414  ;;  %v938_v23 = vadd.f32 1.0, %v1413_v21  ;;  %1436 = vpow2.f32 %v1220_v19 }
 0x127   : > { %v1417_v25 = vpop.eup %1416  ;;  %v920_v26 = vadd.f32 1.0, %v1415_v22 }
 0x128   : > { %v1419_v27 = vpop.eup %1418  ;;  %1438 = vrcp.f32 %v938_v23  ;;  %v936_v28 = vadd.f32 1.0, %v1417_v25 }
 0x129   : > { %v1421_v29 = vpop.eup %1420  ;;  %1440 = vrcp.f32 %v920_v26  ;;  %v925_v30 = vadd.f32 1.0, %v1419_v27 }
 0x12a   : > { %v1423_v31 = vpop.eup %1422  ;;  %1442 = vrcp.f32 %v936_v28  ;;  %v941_v32 = vadd.f32 1.0, %v1421_v29 }
 0x12b   : > { %v1425_v33 = vpop.eup %1424  ;;  %1444 = vrcp.f32 %v925_v30  ;;  %v923_v34 = vadd.f32 1.0, %v1423_v31 }
 0x12c   : > { %v1427_v35 = vpop.eup %1426  ;;  %1446 = vrcp.f32 %v941_v32  ;;  %v939_v36 = vadd.f32 1.0, %v1425_v33 }
 0x12d   : > { %v1429_v37 = vpop.eup %1428  ;;  %1448 = vrcp.f32 %v923_v34  ;;  %v926_v39 = vadd.f32 1.0, %v1427_v35 }
 0x12e   : > { %v1431_v41 = vpop.eup %1430  ;;  %1450 = vrcp.f32 %v939_v36  ;;  %v942_v44 = vadd.f32 1.0, %v1429_v37 }
 0x12f   : > { %v1433_v46 = vpop.eup %1432  ;;  %1452 = vrcp.f32 %v926_v39  ;;  %v924_v47 = vadd.f32 1.0, %v1431_v41 }
 0x130   : > { %v1435_v51 = vpop.eup %1434  ;;  %1454 = vrcp.f32 %v942_v44  ;;  %v940_v52 = vadd.f32 1.0, %v1433_v46 }
 0x131   : > { %v1437_v38 = vpop.eup %1436  ;;  %1456 = vrcp.f32 %v924_v47  ;;  %v929_v55 = vadd.f32 1.0, %v1435_v51 }
 0x132   : > { %v1439_v57 = vpop.eup %1438  ;;  %1458 = vrcp.f32 %v940_v52  ;;  %v945_v58 = vadd.f32 1.0, %v1437_v38 }
 0x133   : > { %v1441_v60 = vpop.eup %1440  ;;  %1034 = vst [vmem:[%s1631_s18 + $0xb8] sm:$0xff] %v1439_v57  ;;  %1460 = vrcp.f32 %v929_v55 }
 0x134   : > { %v1443_v61 = vpop.eup %1442  ;;  %1016 = vst [vmem:[%s1631_s18 + $0x28] sm:$0xff] %v1441_v60  ;;  %1462 = vrcp.f32 %v945_v58 }
 0x135   : > { %v1445_v49 = vpop.eup %1444  ;;  %1032 = vst [vmem:[%s1631_s18 + $0xa8] sm:$0xff] %v1443_v61  ;;  %1464 = vpow2.f32 %v1202_v56 }
 0x136   : > { %v1447_v0 = vpop.eup %1446  ;;  %1021 = vst [vmem:[%s1631_s18 + $0x50] sm:$0xff] %v1445_v49  ;;  %1466 = vpow2.f32 %v1218_v43 }
 0x137   : > { %v1449_v54 = vpop.eup %1448  ;;  %1037 = vst [vmem:[%s1631_s18 + $0xd0] sm:$0xff] %v1447_v0  ;;  %1468 = vpow2.f32 %v1205_v48 }
 0x138   : > { %v1451_v1 = vpop.eup %1450  ;;  %1019 = vst [vmem:[%s1631_s18 + $0x40] sm:$0xff] %v1449_v54  ;;  %1470 = vpow2.f32 %v1221_v62 }
 0x139   : > { %v1453_v2 = vpop.eup %1452  ;;  %1035 = vst [vmem:[%s1631_s18 + $0xc0] sm:$0xff] %v1451_v1  ;;  %1472 = vpow2.f32 %v1203_v63 }
 0x13a   : > { %v1455_v3 = vpop.eup %1454  ;;  %1022 = vst [vmem:[%s1631_s18 + $0x58] sm:$0xff] %v1453_v2  ;;  %1474 = vpow2.f32 %v1219_v24 }
 0x13b   : > { %v1457_v4 = vpop.eup %1456  ;;  %1038 = vst [vmem:[%s1631_s18 + $0xd8] sm:$0xff] %v1455_v3 }
 0x13c   : > { %v1459_v5 = vpop.eup %1458  ;;  %1020 = vst [vmem:[%s1631_s18 + $0x48] sm:$0xff] %v1457_v4 }
 0x13d   : > { %v1461_v6 = vpop.eup %1460  ;;  %1036 = vst [vmem:[%s1631_s18 + $0xc8] sm:$0xff] %v1459_v5 }
 0x13e   : > { %v1463_v7 = vpop.eup %1462  ;;  %1025 = vst [vmem:[%s1631_s18 + $0x70] sm:$0xff] %v1461_v6 }
 0x13f   : > { %v1465_v8 = vpop.eup %1464  ;;  %1041 = vst [vmem:[%s1631_s18 + $0xf0] sm:$0xff] %v1463_v7 }
 0x140   : > { %v1467_v9 = vpop.eup %1466  ;;  %v927_v10 = vadd.f32 1.0, %v1465_v8 }
 0x141   : > { %v1469_v11 = vpop.eup %1468  ;;  %v943_v12 = vadd.f32 1.0, %v1467_v9 }
 0x142   : > { %v1471_v13 = vpop.eup %1470  ;;  %1476 = vrcp.f32 %v927_v10  ;;  %v930_v14 = vadd.f32 1.0, %v1469_v11 }
 0x143   : > { %v1473_v15 = vpop.eup %1472  ;;  %1478 = vrcp.f32 %v943_v12  ;;  %v946_v16 = vadd.f32 1.0, %v1471_v13 }
 0x144   : > { %v1475_v17 = vpop.eup %1474  ;;  %1480 = vrcp.f32 %v930_v14  ;;  %v928_v18 = vadd.f32 1.0, %v1473_v15 }
 0x145   : > { %1482 = vrcp.f32 %v946_v16  ;;  %v944_v19 = vadd.f32 1.0, %v1475_v17 }
 0x146   : > { %1484 = vrcp.f32 %v928_v18 }
 0x147   : > { %1486 = vrcp.f32 %v944_v19 }
 0x14c   : > { %v1477_v20 = vpop.eup %1476 }
 0x14d   : > { %v1479_v21 = vpop.eup %1478  ;;  %1023 = vst [vmem:[%s1631_s18 + $0x60] sm:$0xff] %v1477_v20 }
 0x14e   : > { %v1481_v22 = vpop.eup %1480  ;;  %1039 = vst [vmem:[%s1631_s18 + $0xe0] sm:$0xff] %v1479_v21 }
 0x14f   : > { %v1483_v23 = vpop.eup %1482  ;;  %1026 = vst [vmem:[%s1631_s18 + $0x78] sm:$0xff] %v1481_v22 }
 0x150   : > { %v1485_v25 = vpop.eup %1484  ;;  %1042 = vst [vmem:[%s1631_s18 + $0xf8] sm:$0xff] %v1483_v23 }
 0x151   : > { %v1487_v26 = vpop.eup %1486  ;;  %1024 = vst [vmem:[%s1631_s18 + $0x68] sm:$0xff] %v1485_v25 }
 0x152   : > { %1040 = vst [vmem:[%s1631_s18 + $0xe8] sm:$0xff] %v1487_v26 }
 0x153 PF: > { %s13_s14 = sadd.s32 1, %s1510_s14   ;;  %s1713_s12 = smov %s1506_s13 }
 0x154   : > { %p10_p5 = scmp.ge.s32.totalorder %s13_s14, 4   ;;  %s1714_s13 = smov %s1716_s15 }
 0x156   :  { %12 = sbr.rel (!%p10_p5) target bundleno = 2 (0x2), region = 76 }

</bundles_post_ra>
